<compile_context>
chip_gen: v5e
topology: v5e:2x2
jax: 0.10.0
libtpu: 0.0.40
codegen_flags: <defaults>
</compile_context>

<pallas_src>
import functools

import jax
import jax.numpy as jnp
from jax.experimental import pallas as pl
from jax.experimental.pallas import tpu as pltpu


# ----------------------------------------------------------------------------
# Kernel 1: GroupNorm + stacked (scaled-)q/k/v 1x1 conv, outputs [L, C] layout
# ----------------------------------------------------------------------------
def _norm_qkv_kernel(x_ref, gmat_ref, gamma_ref, beta_ref, wqkv_ref, bqkv_ref,
                     q_ref, k_ref, v_ref, *, num_groups, eps):
    # x_ref    : [1, C, L] one batch element (NCHW flattened over H*W)
    # gmat_ref : [C, C]    group-membership matrix (f32)
    # gamma/beta : [C, 1]  GroupNorm affine (f32)
    # wqkv_ref : [C, 3C]   stacked conv weights, transposed, bf16 (q pre-scaled)
    # bqkv_ref : [1, 3C]   stacked conv bias, f32 (q pre-scaled)
    x = x_ref[0].astype(jnp.float32)                        # [C, L]
    C, L = x.shape
    cg = C // num_groups

    # ---- GroupNorm (all f32) ----------------------------------------------
    stats = jnp.concatenate(                                # [C, 2] packed stats
        [jnp.sum(x, axis=1, keepdims=True),
         jnp.sum(x * x, axis=1, keepdims=True)], axis=1)
    gstats = jnp.dot(gmat_ref[...], stats,
                     preferred_element_type=jnp.float32)    # [C, 2] group sums
    count = jnp.float32(cg * L)
    mean = gstats[:, 0:1] / count
    var = jnp.maximum(gstats[:, 1:2] / count - mean * mean, 0.0)
    inv = jax.lax.rsqrt(var + eps)
    h = (x - mean) * inv * gamma_ref[...] + beta_ref[...]   # [C, L] f32

    # ---- stacked q/k/v 1x1 conv in [L, C] layout (bf16 MXU, f32 acc) -------
    h_t = jnp.transpose(h).astype(jnp.bfloat16)             # [L, C]
    qkv = jnp.dot(h_t, wqkv_ref[...],
                  preferred_element_type=jnp.float32) + bqkv_ref[...]  # [L, 3C]
    q_ref[0] = qkv[:, :C].astype(q_ref.dtype)               # already * C**-0.5
    k_ref[0] = qkv[:, C:2 * C].astype(k_ref.dtype)
    v_ref[0] = qkv[:, 2 * C:].astype(v_ref.dtype)


# ----------------------------------------------------------------------------
# Kernel 2: per-query-tile attention + proj_out + residual
# ----------------------------------------------------------------------------
def _attn_proj_kernel(q_ref, k_ref, v_ref, x_ref, wp_ref, bp_ref, o_ref):
    # q_ref : [1, TQ, C] bf16 (scale folded in)     k/v_ref : [1, L, C] bf16
    # x_ref : [1, C, TQ] residual tile              wp : [C, C] bf16, bp : [C, 1] f32
    q = q_ref[0]                                             # [TQ, C]
    k = k_ref[0]                                             # [L, C]
    v = v_ref[0]                                             # [L, C]

    # scores[TQ, L] = q @ k^T  (contract feature dim of both: native NT form)
    s = jax.lax.dot_general(q, k, (((1,), (1,)), ((), ())),
                            preferred_element_type=jnp.float32)
    m = jnp.max(s, axis=-1, keepdims=True)                   # [TQ, 1] f32
    p = jnp.exp(s - m)                                       # unnormalized, f32
    denom = jnp.sum(p, axis=-1, keepdims=True)               # [TQ, 1] f32

    # attn[TQ, C] = p @ v  (plain NN matmul), normalize AFTER the PV product
    attn = jax.lax.dot_general(p.astype(jnp.bfloat16), v,
                               (((1,), (0,)), ((), ())),
                               preferred_element_type=jnp.float32)
    attn = attn * pl.reciprocal(denom, approx=True)          # [TQ, C] f32

    # proj_out: out[C, TQ] = wp @ attn^T (native NT form) + bias, + residual
    o = jax.lax.dot_general(wp_ref[...], attn.astype(jnp.bfloat16),
                            (((1,), (1,)), ((), ())),
                            preferred_element_type=jnp.float32) + bp_ref[...]
    o_ref[0] = (x_ref[0].astype(jnp.float32) + o).astype(o_ref.dtype)


# ----------------------------------------------------------------------------
# Helpers
# ----------------------------------------------------------------------------
def _group_membership(C, num_groups, dtype=jnp.float32):
    g = jnp.arange(C) // (C // num_groups)
    return (g[:, None] == g[None, :]).astype(dtype)          # [C, C]


def _pick_query_tile(L):
    # Prefer 128-aligned tiles with at least 2 tiles (feeds megacore on v7x).
    for tq in (512, 256, 128):
        if L % tq == 0 and L // tq >= 2:
            return tq
    for tq in (512, 256, 128):
        if L % tq == 0:
            return tq
    return L


def _vmem_limit_bytes():
    # Generation-aware budget: ~56 MiB on v7x (64 MiB/TC), ~100 MiB on v5e/v6e.
    try:
        cap = pltpu.get_tpu_info().vmem_capacity_bytes
    except Exception:
        cap = 64 * 1024 * 1024
    return int(min(cap - 8 * 1024 * 1024, 100 * 1024 * 1024))


# ----------------------------------------------------------------------------
# Module forward
# ----------------------------------------------------------------------------
@functools.partial(jax.jit, static_argnames=("num_groups", "eps"))
def attn_block_forward(x, params, *, num_groups=32, eps=1e-6):
    """x: [N, C, H, W] (NCHW). Returns [N, C, H, W]."""
    N, C, H, W = x.shape
    L = H * W
    f32 = jnp.float32
    bf16 = jnp.bfloat16
    vmem_limit = _vmem_limit_bytes()

    # ---- host-side parameter prep ------------------------------------------
    gamma = params["norm_gamma"].reshape(C, 1).astype(f32)
    beta = params["norm_beta"].reshape(C, 1).astype(f32)
    scale = float(C) ** -0.5                                  # folded into q
    w_stack = jnp.concatenate(
        [params["wq"] * scale, params["wk"], params["wv"]], axis=0)   # [3C, C]
    wqkv_t = jnp.transpose(w_stack).astype(bf16)                       # [C, 3C]
    bqkv = jnp.concatenate(
        [params["bq"] * scale, params["bk"], params["bv"]],
        axis=0).reshape(1, 3 * C).astype(f32)
    wp = params["wp"].astype(bf16)
    bp = params["bp"].reshape(C, 1).astype(f32)
    gmat = _group_membership(C, num_groups, f32)

    x_flat = x.reshape(N, C, L)                               # pure reshape

    # ---- kernel 1: GroupNorm + stacked qkv conv -----------------------------
    norm_qkv = pl.pallas_call(
        functools.partial(_norm_qkv_kernel, num_groups=num_groups, eps=eps),
        out_shape=(jax.ShapeDtypeStruct((N, L, C), bf16),
                   jax.ShapeDtypeStruct((N, L, C), bf16),
                   jax.ShapeDtypeStruct((N, L, C), bf16)),
        grid_spec=pltpu.PrefetchScalarGridSpec(
            num_scalar_prefetch=0,
            grid=(N,),
            in_specs=[
                pl.BlockSpec((1, C, L), lambda n: (n, 0, 0)),     # x
                pl.BlockSpec((C, C), lambda n: (0, 0)),           # gmat
                pl.BlockSpec((C, 1), lambda n: (0, 0)),           # gamma
                pl.BlockSpec((C, 1), lambda n: (0, 0)),           # beta
                pl.BlockSpec((C, 3 * C), lambda n: (0, 0)),       # wqkv^T
                pl.BlockSpec((1, 3 * C), lambda n: (0, 0)),       # bqkv
            ],
            out_specs=[
                pl.BlockSpec((1, L, C), lambda n: (n, 0, 0)),     # q (scaled)
                pl.BlockSpec((1, L, C), lambda n: (n, 0, 0)),     # k
                pl.BlockSpec((1, L, C), lambda n: (n, 0, 0)),     # v
            ],
        ),
        compiler_params=pltpu.CompilerParams(
            dimension_semantics=("parallel",),
            vmem_limit_bytes=vmem_limit,
        ),
    )
    q_t, k_t, v_t = norm_qkv(x_flat, gmat, gamma, beta, wqkv_t, bqkv)

    # ---- kernel 2: query-tiled attention + proj_out + residual --------------
    TQ = _pick_query_tile(L)
    num_tiles = L // TQ

    out_flat = pl.pallas_call(
        _attn_proj_kernel,
        out_shape=jax.ShapeDtypeStruct((N, C, L), x.dtype),
        grid_spec=pltpu.PrefetchScalarGridSpec(
            num_scalar_prefetch=0,
            grid=(N, num_tiles),
            in_specs=[
                pl.BlockSpec((1, TQ, C), lambda n, t: (n, t, 0)),  # q tile
                pl.BlockSpec((1, L, C), lambda n, t: (n, 0, 0)),   # k (resident)
                pl.BlockSpec((1, L, C), lambda n, t: (n, 0, 0)),   # v (resident)
                pl.BlockSpec((1, C, TQ), lambda n, t: (n, 0, t)),  # x residual tile
                pl.BlockSpec((C, C), lambda n, t: (0, 0)),         # wp
                pl.BlockSpec((C, 1), lambda n, t: (0, 0)),         # bp
            ],
            out_specs=pl.BlockSpec((1, C, TQ), lambda n, t: (n, 0, t)),
        ),
        compiler_params=pltpu.CompilerParams(
            dimension_semantics=("parallel", "parallel"),
            vmem_limit_bytes=vmem_limit,
        ),
    )(q_t, k_t, v_t, x_flat, wp, bp)

    return out_flat.reshape(N, C, H, W)


# ----------------------------------------------------------------------------
# Pure-JAX reference (same semantics as the torch forward)
# ----------------------------------------------------------------------------
def attn_block_reference(x, params, *, num_groups=32, eps=1e-6):
    N, C, H, W = x.shape
    g, b = params["norm_gamma"], params["norm_beta"]
    xg = x.reshape(N, num_groups, C // num_groups, H, W)
    mean = xg.mean(axis=(2, 3, 4), keepdims=True)
    var = ((xg - mean) ** 2).mean(axis=(2, 3, 4), keepdims=True)
    h = ((xg - mean) / jnp.sqrt(var + eps)).reshape(N, C, H, W)
    h = h * g[None, :, None, None] + b[None, :, None, None]

    def conv1x1(t, w, bb):
        return jnp.einsum("oc,nchw->nohw", w, t) + bb[None, :, None, None]

    q = conv1x1(h, params["wq"], params["bq"])
    k = conv1x1(h, params["wk"], params["bk"])
    v = conv1x1(h, params["wv"], params["bv"])

    L = H * W
    qf = q.reshape(N, C, L).transpose(0, 2, 1)
    kf = k.reshape(N, C, L).transpose(0, 2, 1)
    vf = v.reshape(N, C, L).transpose(0, 2, 1)
    scores = jnp.einsum("nlc,nmc->nlm", qf, kf) * (C ** -0.5)
    p = jax.nn.softmax(scores, axis=-1)
    of = jnp.einsum("nlm,nmc->nlc", p, vf)
    o = of.transpose(0, 2, 1).reshape(N, C, H, W)
    o = conv1x1(o, params["wp"], params["bp"])
    return x + o


# ----------------------------------------------------------------------------
# Deterministic parameter init (torch defaults: GroupNorm affine ~ 1/0,
# Conv2d 1x1 kaiming-uniform bound = 1/sqrt(fan_in)); affine slightly
# randomized so the gamma/beta path is exercised.
# ----------------------------------------------------------------------------
def init_params(key, C):
    ks = jax.random.split(key, 10)
    bound = float(C) ** -0.5

    def u(k, shape):
        return jax.random.uniform(k, shape, jnp.float32, -bound, bound)

    return dict(
        norm_gamma=1.0 + 0.1 * jax.random.normal(ks[0], (C,), jnp.float32),
        norm_beta=0.1 * jax.random.normal(ks[1], (C,), jnp.float32),
        wq=u(ks[2], (C, C)), bq=u(ks[3], (C,)),
        wk=u(ks[4], (C, C)), bk=u(ks[5], (C,)),
        wv=u(ks[6], (C, C)), bv=u(ks[7], (C,)),
        wp=u(ks[8], (C, C)), bp=u(ks[9], (C,)),
    )


if __name__ == "__main__":
    key = jax.random.PRNGKey(0)
    k_x, k_p = jax.random.split(key)

    # GroupNorm(num_groups=32) requires C % 32 == 0; L = H*W = 256 is
    # lane-dense and gives 2 query tiles of 128 (exercises the tiled path).
    N, C, H, W = 2, 64, 16, 16
    x = jax.random.normal(k_x, (N, C, H, W), jnp.float32)
    params = init_params(k_p, C)

    out = attn_block_forward(x, params)
    out = jax.block_until_ready(out)
    assert out.shape == (N, C, H, W), out.shape

    ref = attn_block_reference(x, params)
    err = float(jnp.max(jnp.abs(out - ref)))
    assert jnp.allclose(out, ref, rtol=2e-2, atol=2e-2), f"max abs err {err}"

    print("KERNEL_OK")
</pallas_src>

<mosaic_0001>
module attributes {stable_mosaic.version = 11 : i64} {
  func.func @_attn_proj_kernel(%arg0: i32, %arg1: i32, %arg2: memref<1x128x64xbf16, #tpu.memory_space<vmem>>, %arg3: memref<1x256x64xbf16, #tpu.memory_space<vmem>>, %arg4: memref<1x256x64xbf16, #tpu.memory_space<vmem>>, %arg5: memref<1x64x128xf32, #tpu.memory_space<vmem>>, %arg6: memref<64x64xbf16, #tpu.memory_space<vmem>>, %arg7: memref<64x1xf32, #tpu.memory_space<vmem>>, %arg8: memref<1x64x128xf32, #tpu.memory_space<vmem>>) attributes {dimension_semantics = [#tpu.dimension_semantics<parallel>, #tpu.dimension_semantics<parallel>], iteration_bounds = array<i64: 2, 2>, scalar_prefetch = 0 : i64, scratch_operands = 0 : i64, tpu.core_type = #tpu.core_type<tc>, window_params = [{transform_indices = @transform_0, window_bounds = array<i64: 1, 128, 64>}, {transform_indices = @transform_1, window_bounds = array<i64: 1, 256, 64>}, {transform_indices = @transform_2, window_bounds = array<i64: 1, 256, 64>}, {transform_indices = @transform_3, window_bounds = array<i64: 1, 64, 128>}, {pipeline_mode = #tpu.pipeline_mode<synchronous>, transform_indices = @transform_4, window_bounds = array<i64: 64, 64>}, {pipeline_mode = #tpu.pipeline_mode<synchronous>, transform_indices = @transform_5, window_bounds = array<i64: 64, 1>}, {transform_indices = @transform_6, window_bounds = array<i64: 1, 64, 128>}]} {
    %c0 = arith.constant 0 : index
    %c0_0 = arith.constant 0 : index
    %c0_1 = arith.constant 0 : index
    %0 = vector.load %arg2[%c0, %c0_0, %c0_1] : memref<1x128x64xbf16, #tpu.memory_space<vmem>>, vector<1x128x64xbf16>
    %1 = vector.shape_cast %0 : vector<1x128x64xbf16> to vector<128x64xbf16>
    %c0_2 = arith.constant 0 : index
    %c0_3 = arith.constant 0 : index
    %c0_4 = arith.constant 0 : index
    %2 = vector.load %arg3[%c0_2, %c0_3, %c0_4] : memref<1x256x64xbf16, #tpu.memory_space<vmem>>, vector<1x256x64xbf16>
    %3 = vector.shape_cast %2 : vector<1x256x64xbf16> to vector<256x64xbf16>
    %c0_5 = arith.constant 0 : index
    %c0_6 = arith.constant 0 : index
    %c0_7 = arith.constant 0 : index
    %4 = vector.load %arg4[%c0_5, %c0_6, %c0_7] : memref<1x256x64xbf16, #tpu.memory_space<vmem>>, vector<1x256x64xbf16>
    %5 = vector.shape_cast %4 : vector<1x256x64xbf16> to vector<256x64xbf16>
    %cst = arith.constant dense<0.000000e+00> : vector<128x256xf32>
    %6 = tpu.matmul %1, %3, %cst {dimension_numbers = #tpu.dot_dimension_numbers<[1], [1], [0], [0], [0, 0, 1, 0], [], []>} : vector<128x64xbf16>, vector<256x64xbf16>, vector<128x256xf32> -> vector<128x256xf32>
    %cst_8 = arith.constant dense<0xFF800000> : vector<128xf32>
    %7 = vector.multi_reduction <maximumf>, %6, %cst_8 [1] : vector<128x256xf32> to vector<128xf32>
    %8 = vector.shape_cast %7 : vector<128xf32> to vector<128x1xf32>
    %9 = vector.broadcast %8 : vector<128x1xf32> to vector<128x256xf32>
    %10 = arith.subf %6, %9 : vector<128x256xf32>
    %11 = math.exp %10 : vector<128x256xf32>
    %cst_9 = arith.constant dense<0.000000e+00> : vector<128xf32>
    %12 = vector.multi_reduction <add>, %11, %cst_9 [1] : vector<128x256xf32> to vector<128xf32>
    %13 = vector.shape_cast %12 : vector<128xf32> to vector<128x1xf32>
    %14 = arith.truncf %11 : vector<128x256xf32> to vector<128x256xbf16>
    %cst_10 = arith.constant dense<0.000000e+00> : vector<128x64xf32>
    %15 = tpu.matmul %14, %5, %cst_10 {dimension_numbers = #tpu.dot_dimension_numbers<[1], [0], [0], [1], [0, 0, 1, 1], [], []>} : vector<128x256xbf16>, vector<256x64xbf16>, vector<128x64xf32> -> vector<128x64xf32>
    %16 = tpu.reciprocal %13 {approx = true} : vector<128x1xf32> -> vector<128x1xf32>
    %17 = vector.broadcast %16 : vector<128x1xf32> to vector<128x64xf32>
    %18 = arith.mulf %15, %17 : vector<128x64xf32>
    %c0_11 = arith.constant 0 : index
    %c0_12 = arith.constant 0 : index
    %19 = vector.load %arg6[%c0_11, %c0_12] : memref<64x64xbf16, #tpu.memory_space<vmem>>, vector<64x64xbf16>
    %20 = arith.truncf %18 : vector<128x64xf32> to vector<128x64xbf16>
    %cst_13 = arith.constant dense<0.000000e+00> : vector<64x128xf32>
    %21 = tpu.matmul %19, %20, %cst_13 {dimension_numbers = #tpu.dot_dimension_numbers<[1], [1], [0], [0], [0, 0, 1, 0], [], []>} : vector<64x64xbf16>, vector<128x64xbf16>, vector<64x128xf32> -> vector<64x128xf32>
    %c0_14 = arith.constant 0 : index
    %c0_15 = arith.constant 0 : index
    %22 = vector.load %arg7[%c0_14, %c0_15] : memref<64x1xf32, #tpu.memory_space<vmem>>, vector<64x1xf32>
    %23 = vector.broadcast %22 : vector<64x1xf32> to vector<64x128xf32>
    %24 = arith.addf %21, %23 : vector<64x128xf32>
    %c0_16 = arith.constant 0 : index
    %c0_17 = arith.constant 0 : index
    %c0_18 = arith.constant 0 : index
    %25 = vector.load %arg5[%c0_16, %c0_17, %c0_18] : memref<1x64x128xf32, #tpu.memory_space<vmem>>, vector<1x64x128xf32>
    %26 = vector.shape_cast %25 : vector<1x64x128xf32> to vector<64x128xf32>
    %27 = arith.addf %26, %24 : vector<64x128xf32>
    %c0_19 = arith.constant 0 : index
    %c0_20 = arith.constant 0 : index
    %c0_21 = arith.constant 0 : index
    %28 = vector.load %arg8[%c0_19, %c0_20, %c0_21] : memref<1x64x128xf32, #tpu.memory_space<vmem>>, vector<1x64x128xf32>
    %29 = vector.shape_cast %28 : vector<1x64x128xf32> to vector<64x128xf32>
    %30 = vector.shape_cast %27 : vector<64x128xf32> to vector<1x64x128xf32>
    tpu.vector_store %arg8[%c0_19, %c0_20, %c0_21], %30 {strides = array<i32>} : memref<1x64x128xf32, #tpu.memory_space<vmem>>, vector<1x64x128xf32>,
    return
  }
  func.func @transform_0(%arg0: i32, %arg1: i32) -> (i32, i32, i32) {
    %c0_i32 = arith.constant 0 : i32
    %c0_i32_0 = arith.constant 0 : i32
    return %arg0, %arg1, %c0_i32 : i32, i32, i32
  }
  func.func @transform_1(%arg0: i32, %arg1: i32) -> (i32, i32, i32) {
    %c0_i32 = arith.constant 0 : i32
    %c0_i32_0 = arith.constant 0 : i32
    %c0_i32_1 = arith.constant 0 : i32
    return %arg0, %c0_i32, %c0_i32_0 : i32, i32, i32
  }
  func.func @transform_2(%arg0: i32, %arg1: i32) -> (i32, i32, i32) {
    %c0_i32 = arith.constant 0 : i32
    %c0_i32_0 = arith.constant 0 : i32
    %c0_i32_1 = arith.constant 0 : i32
    return %arg0, %c0_i32, %c0_i32_0 : i32, i32, i32
  }
  func.func @transform_3(%arg0: i32, %arg1: i32) -> (i32, i32, i32) {
    %c0_i32 = arith.constant 0 : i32
    %c0_i32_0 = arith.constant 0 : i32
    return %arg0, %c0_i32, %arg1 : i32, i32, i32
  }
  func.func @transform_4(%arg0: i32, %arg1: i32) -> (i32, i32) {
    %c0_i32 = arith.constant 0 : i32
    %c0_i32_0 = arith.constant 0 : i32
    %c0_i32_1 = arith.constant 0 : i32
    return %c0_i32, %c0_i32_0 : i32, i32
  }
  func.func @transform_5(%arg0: i32, %arg1: i32) -> (i32, i32) {
    %c0_i32 = arith.constant 0 : i32
    %c0_i32_0 = arith.constant 0 : i32
    %c0_i32_1 = arith.constant 0 : i32
    return %c0_i32, %c0_i32_0 : i32, i32
  }
  func.func @transform_6(%arg0: i32, %arg1: i32) -> (i32, i32, i32) {
    %c0_i32 = arith.constant 0 : i32
    %c0_i32_0 = arith.constant 0 : i32
    return %arg0, %c0_i32, %arg1 : i32, i32, i32
  }
}

module attributes {stable_mosaic.version = 11 : i64} {
  func.func @_norm_qkv_kernel(%arg0: i32, %arg1: memref<1x64x256xf32, #tpu.memory_space<vmem>>, %arg2: memref<64x64xf32, #tpu.memory_space<vmem>>, %arg3: memref<64x1xf32, #tpu.memory_space<vmem>>, %arg4: memref<64x1xf32, #tpu.memory_space<vmem>>, %arg5: memref<64x192xbf16, #tpu.memory_space<vmem>>, %arg6: memref<1x192xf32, #tpu.memory_space<vmem>>, %arg7: memref<1x256x64xbf16, #tpu.memory_space<vmem>>, %arg8: memref<1x256x64xbf16, #tpu.memory_space<vmem>>, %arg9: memref<1x256x64xbf16, #tpu.memory_space<vmem>>) attributes {dimension_semantics = [#tpu.dimension_semantics<parallel>], iteration_bounds = array<i64: 2>, scalar_prefetch = 0 : i64, scratch_operands = 0 : i64, tpu.core_type = #tpu.core_type<tc>, window_params = [{transform_indices = @transform_0, window_bounds = array<i64: 1, 64, 256>}, {pipeline_mode = #tpu.pipeline_mode<synchronous>, transform_indices = @transform_1, window_bounds = array<i64: 64, 64>}, {pipeline_mode = #tpu.pipeline_mode<synchronous>, transform_indices = @transform_2, window_bounds = array<i64: 64, 1>}, {pipeline_mode = #tpu.pipeline_mode<synchronous>, transform_indices = @transform_3, window_bounds = array<i64: 64, 1>}, {pipeline_mode = #tpu.pipeline_mode<synchronous>, transform_indices = @transform_4, window_bounds = array<i64: 64, 192>}, {pipeline_mode = #tpu.pipeline_mode<synchronous>, transform_indices = @transform_5, window_bounds = array<i64: 1, 192>}, {transform_indices = @transform_6, window_bounds = array<i64: 1, 256, 64>}, {transform_indices = @transform_7, window_bounds = array<i64: 1, 256, 64>}, {transform_indices = @transform_8, window_bounds = array<i64: 1, 256, 64>}]} {
    %c0 = arith.constant 0 : index
    %c0_0 = arith.constant 0 : index
    %c0_1 = arith.constant 0 : index
    %0 = vector.load %arg1[%c0, %c0_0, %c0_1] : memref<1x64x256xf32, #tpu.memory_space<vmem>>, vector<1x64x256xf32>
    %1 = vector.shape_cast %0 : vector<1x64x256xf32> to vector<64x256xf32>
    %cst = arith.constant dense<0.000000e+00> : vector<64xf32>
    %2 = vector.multi_reduction <add>, %1, %cst [1] : vector<64x256xf32> to vector<64xf32>
    %3 = vector.shape_cast %2 : vector<64xf32> to vector<64x1xf32>
    %4 = arith.mulf %1, %1 : vector<64x256xf32>
    %cst_2 = arith.constant dense<0.000000e+00> : vector<64xf32>
    %5 = vector.multi_reduction <add>, %4, %cst_2 [1] : vector<64x256xf32> to vector<64xf32>
    %6 = vector.shape_cast %5 : vector<64xf32> to vector<64x1xf32>
    %7 = tpu.concatenate %3, %6 in 1 : vector<64x1xf32>, vector<64x1xf32> -> vector<64x2xf32>
    %c0_3 = arith.constant 0 : index
    %c0_4 = arith.constant 0 : index
    %8 = vector.load %arg2[%c0_3, %c0_4] : memref<64x64xf32, #tpu.memory_space<vmem>>, vector<64x64xf32>
    %cst_5 = arith.constant dense<0.000000e+00> : vector<64x2xf32>
    %9 = tpu.matmul %8, %7, %cst_5 {dimension_numbers = #tpu.dot_dimension_numbers<[1], [0], [0], [1], [0, 0, 1, 1], [], []>} : vector<64x64xf32>, vector<64x2xf32>, vector<64x2xf32> -> vector<64x2xf32>
    %10 = vector.extract_strided_slice %9 {offsets = [0, 0], sizes = [64, 1], strides = [1, 1]} : vector<64x2xf32> to vector<64x1xf32>
    %cst_6 = arith.constant 5.120000e+02 : f32
    %11 = vector.broadcast %cst_6 : f32 to vector<64x1xf32>
    %12 = arith.divf %10, %11 : vector<64x1xf32>
    %13 = vector.extract_strided_slice %9 {offsets = [0, 1], sizes = [64, 1], strides = [1, 1]} : vector<64x2xf32> to vector<64x1xf32>
    %cst_7 = arith.constant 5.120000e+02 : f32
    %14 = vector.broadcast %cst_7 : f32 to vector<64x1xf32>
    %15 = arith.divf %13, %14 : vector<64x1xf32>
    %16 = arith.mulf %12, %12 : vector<64x1xf32>
    %17 = arith.subf %15, %16 : vector<64x1xf32>
    %cst_8 = arith.constant 0.000000e+00 : f32
    %18 = vector.broadcast %cst_8 : f32 to vector<64x1xf32>
    %19 = arith.maximumf %17, %18 : vector<64x1xf32>
    %cst_9 = arith.constant 9.99999997E-7 : f32
    %20 = vector.broadcast %cst_9 : f32 to vector<64x1xf32>
    %21 = arith.addf %19, %20 : vector<64x1xf32>
    %22 = math.rsqrt %21 : vector<64x1xf32>
    %23 = vector.broadcast %12 : vector<64x1xf32> to vector<64x256xf32>
    %24 = arith.subf %1, %23 : vector<64x256xf32>
    %25 = vector.broadcast %22 : vector<64x1xf32> to vector<64x256xf32>
    %26 = arith.mulf %24, %25 : vector<64x256xf32>
    %c0_10 = arith.constant 0 : index
    %c0_11 = arith.constant 0 : index
    %27 = vector.load %arg3[%c0_10, %c0_11] : memref<64x1xf32, #tpu.memory_space<vmem>>, vector<64x1xf32>
    %28 = vector.broadcast %27 : vector<64x1xf32> to vector<64x256xf32>
    %29 = arith.mulf %26, %28 : vector<64x256xf32>
    %c0_12 = arith.constant 0 : index
    %c0_13 = arith.constant 0 : index
    %30 = vector.load %arg4[%c0_12, %c0_13] : memref<64x1xf32, #tpu.memory_space<vmem>>, vector<64x1xf32>
    %31 = vector.broadcast %30 : vector<64x1xf32> to vector<64x256xf32>
    %32 = arith.addf %29, %31 : vector<64x256xf32>
    %33 = tpu.transpose %32, [1, 0] : vector<64x256xf32> -> vector<256x64xf32>
    %34 = arith.truncf %33 : vector<256x64xf32> to vector<256x64xbf16>
    %c0_14 = arith.constant 0 : index
    %c0_15 = arith.constant 0 : index
    %35 = vector.load %arg5[%c0_14, %c0_15] : memref<64x192xbf16, #tpu.memory_space<vmem>>, vector<64x192xbf16>
    %cst_16 = arith.constant dense<0.000000e+00> : vector<256x192xf32>
    %36 = tpu.matmul %34, %35, %cst_16 {dimension_numbers = #tpu.dot_dimension_numbers<[1], [0], [0], [1], [0, 0, 1, 1], [], []>} : vector<256x64xbf16>, vector<64x192xbf16>, vector<256x192xf32> -> vector<256x192xf32>
    %c0_17 = arith.constant 0 : index
    %c0_18 = arith.constant 0 : index
    %37 = vector.load %arg6[%c0_17, %c0_18] : memref<1x192xf32, #tpu.memory_space<vmem>>, vector<1x192xf32>
    %38 = vector.broadcast %37 : vector<1x192xf32> to vector<256x192xf32>
    %39 = arith.addf %36, %38 : vector<256x192xf32>
    %40 = vector.extract_strided_slice %39 {offsets = [0, 0], sizes = [256, 64], strides = [1, 1]} : vector<256x192xf32> to vector<256x64xf32>
    %41 = arith.truncf %40 : vector<256x64xf32> to vector<256x64xbf16>
    %c0_19 = arith.constant 0 : index
    %c0_20 = arith.constant 0 : index
    %c0_21 = arith.constant 0 : index
    %42 = vector.load %arg7[%c0_19, %c0_20, %c0_21] : memref<1x256x64xbf16, #tpu.memory_space<vmem>>, vector<1x256x64xbf16>
    %43 = vector.shape_cast %42 : vector<1x256x64xbf16> to vector<256x64xbf16>
    %44 = vector.shape_cast %41 : vector<256x64xbf16> to vector<1x256x64xbf16>
    tpu.vector_store %arg7[%c0_19, %c0_20, %c0_21], %44 {strides = array<i32>} : memref<1x256x64xbf16, #tpu.memory_space<vmem>>, vector<1x256x64xbf16>,
    %45 = vector.extract_strided_slice %39 {offsets = [0, 64], sizes = [256, 64], strides = [1, 1]} : vector<256x192xf32> to vector<256x64xf32>
    %46 = arith.truncf %45 : vector<256x64xf32> to vector<256x64xbf16>
    %c0_22 = arith.constant 0 : index
    %c0_23 = arith.constant 0 : index
    %c0_24 = arith.constant 0 : index
    %47 = vector.load %arg8[%c0_22, %c0_23, %c0_24] : memref<1x256x64xbf16, #tpu.memory_space<vmem>>, vector<1x256x64xbf16>
    %48 = vector.shape_cast %47 : vector<1x256x64xbf16> to vector<256x64xbf16>
    %49 = vector.shape_cast %46 : vector<256x64xbf16> to vector<1x256x64xbf16>
    tpu.vector_store %arg8[%c0_22, %c0_23, %c0_24], %49 {strides = array<i32>} : memref<1x256x64xbf16, #tpu.memory_space<vmem>>, vector<1x256x64xbf16>,
    %50 = vector.extract_strided_slice %39 {offsets = [0, 128], sizes = [256, 64], strides = [1, 1]} : vector<256x192xf32> to vector<256x64xf32>
    %51 = arith.truncf %50 : vector<256x64xf32> to vector<256x64xbf16>
    %c0_25 = arith.constant 0 : index
    %c0_26 = arith.constant 0 : index
    %c0_27 = arith.constant 0 : index
    %52 = vector.load %arg9[%c0_25, %c0_26, %c0_27] : memref<1x256x64xbf16, #tpu.memory_space<vmem>>, vector<1x256x64xbf16>
    %53 = vector.shape_cast %52 : vector<1x256x64xbf16> to vector<256x64xbf16>
    %54 = vector.shape_cast %51 : vector<256x64xbf16> to vector<1x256x64xbf16>
    tpu.vector_store %arg9[%c0_25, %c0_26, %c0_27], %54 {strides = array<i32>} : memref<1x256x64xbf16, #tpu.memory_space<vmem>>, vector<1x256x64xbf16>,
    return
  }
  func.func @transform_0(%arg0: i32) -> (i32, i32, i32) {
    %c0_i32 = arith.constant 0 : i32
    %c0_i32_0 = arith.constant 0 : i32
    %c0_i32_1 = arith.constant 0 : i32
    return %arg0, %c0_i32, %c0_i32_0 : i32, i32, i32
  }
  func.func @transform_1(%arg0: i32) -> (i32, i32) {
    %c0_i32 = arith.constant 0 : i32
    %c0_i32_0 = arith.constant 0 : i32
    %c0_i32_1 = arith.constant 0 : i32
    return %c0_i32, %c0_i32_0 : i32, i32
  }
  func.func @transform_2(%arg0: i32) -> (i32, i32) {
    %c0_i32 = arith.constant 0 : i32
    %c0_i32_0 = arith.constant 0 : i32
    %c0_i32_1 = arith.constant 0 : i32
    return %c0_i32, %c0_i32_0 : i32, i32
  }
  func.func @transform_3(%arg0: i32) -> (i32, i32) {
    %c0_i32 = arith.constant 0 : i32
    %c0_i32_0 = arith.constant 0 : i32
    %c0_i32_1 = arith.constant 0 : i32
    return %c0_i32, %c0_i32_0 : i32, i32
  }
  func.func @transform_4(%arg0: i32) -> (i32, i32) {
    %c0_i32 = arith.constant 0 : i32
    %c0_i32_0 = arith.constant 0 : i32
    %c0_i32_1 = arith.constant 0 : i32
    return %c0_i32, %c0_i32_0 : i32, i32
  }
  func.func @transform_5(%arg0: i32) -> (i32, i32) {
    %c0_i32 = arith.constant 0 : i32
    %c0_i32_0 = arith.constant 0 : i32
    %c0_i32_1 = arith.constant 0 : i32
    return %c0_i32, %c0_i32_0 : i32, i32
  }
  func.func @transform_6(%arg0: i32) -> (i32, i32, i32) {
    %c0_i32 = arith.constant 0 : i32
    %c0_i32_0 = arith.constant 0 : i32
    %c0_i32_1 = arith.constant 0 : i32
    return %arg0, %c0_i32, %c0_i32_0 : i32, i32, i32
  }
  func.func @transform_7(%arg0: i32) -> (i32, i32, i32) {
    %c0_i32 = arith.constant 0 : i32
    %c0_i32_0 = arith.constant 0 : i32
    %c0_i32_1 = arith.constant 0 : i32
    return %arg0, %c0_i32, %c0_i32_0 : i32, i32, i32
  }
  func.func @transform_8(%arg0: i32) -> (i32, i32, i32) {
    %c0_i32 = arith.constant 0 : i32
    %c0_i32_0 = arith.constant 0 : i32
    %c0_i32_1 = arith.constant 0 : i32
    return %arg0, %c0_i32, %c0_i32_0 : i32, i32, i32
  }
}

</mosaic_0001>

<bundles_post_ra>
// kernel: attn_block_forward.3
= control target key start
LH: loop header
LB: loop body
LE: loop exit
PB: predicated region body
PF: predicated region fallthrough
CT: control target
= control target key end

     0   :  { %s2087_s21 = smov 0   ;;  %s2089_s22 = smov 0   ;;  %s2614_s0 = inlined_call_operand.vmem [shape: bf16[2,256,64], index: 0, kind: input, shape index: {}]   ;;  %s2615_s1 = inlined_call_operand.vmem [shape: bf16[2,256,64], index: 1, kind: input, shape index: {}]   ;;  %s2616_s2 = inlined_call_operand.vmem [shape: bf16[2,256,64], index: 2, kind: input, shape index: {}]   ;;  %s2617_s3 = inlined_call_operand.vmem [shape: f32[2,64,256], index: 3, kind: input, shape index: {}]   ;;  %s2618_s4 = inlined_call_operand.vmem [shape: bf16[64,64], index: 4, kind: input, shape index: {}]   ;;  %s2619_s5 = inlined_call_operand.vmem [shape: f32[64,1], index: 5, kind: input, shape index: {}]   ;;  %s2620_s6 = inlined_call_operand.vmem [shape: f32[2,64,256], index: 6, kind: output, shape index: {}]  }
   0x1   :  { %s2091_s23 = smov 0   ;;  %s2093_s24 = smov 0  }
   0x2   :  { %s2095_s25 = smov 0   ;;  %s2097_s26 = smov 0  }
   0x3   :  { %s2099_s27 = smov 0  }
   0x4 LB: > { %s25_s28 = sadd.s32 1, %s2041_s25  ;;  %s28_s29 = sadd.s32 1, %s2045_s26  ;;  %s2049_s27 = sphi %s2099_s27, %s16_s27   ;;  %s2045_s26 = sphi %s2097_s26, %s2627_s26   ;;  %s2041_s25 = sphi %s2095_s25, %s2626_s25   ;;  %s2037_s24 = sphi %s2093_s24, %s2625_s24   ;;  %s2033_s23 = sphi %s2091_s23, %s2624_s23   ;;  %s2029_s22 = sphi %s2089_s22, %s2623_s22   ;;  %s2025_s21 = sphi %s2087_s21, %s2622_s21  }
   0x5   : > { %p26_p0 = scmp.ge.s32.totalorder %s25_s28, 2  ;;  %s1567_s30 = sadd.s32 4294967295, %s2049_s27  }
   0x6   : > { %p124_p1 = scmp.ne.s32.totalorder %s2029_s22, %s2025_s21  ;;  %p125_p2 = scmp.eq.s32.totalorder %s2049_s27, 0 }
   0x7   : > { %s2629_s28 = smov (%p26_p0, %s25_s28), 0  ;;  %s2631_s29 = smov (!%p26_p0, %s28_s29), %s2045_s26 }
   0x8   : > { %p30_p3 = scmp.ge.s32.totalorder %s2631_s29, 2  ;;  %p198_p4 = scmp.eq.s32.totalorder %s1567_s30, 3 }
   0x9   : > { %s113_s7 = ssub.s32 %s2041_s25, %s2629_s28  ;;  %p126_p5 = por %p125_p2, %p124_p1 }
   0xa   : > { %s2633_s29 = smov (%p30_p3, %s2631_s29), 0  ;;  %p2135_p6 = por %p198_p4, %p124_p1 }
   0xb   : > { %s112_s9 = ssub.s32 %s2045_s26, %s2633_s29  ;;  %s117_s11 = sadd.s32 1, %s2029_s22 }
   0xc   : > { %s114_s10 = sor.u32 %s113_s7, %s112_s9  ;;  %p1570_p8 = scmp.ge.s32.totalorder %s2049_s27, 4 }
   0xd   : > { %p115_p7 = scmp.eq.s32.totalorder %s114_s10, 0 }
   0xe   : > { %226 = sbr.rel (%p1570_p8) target bundleno = 33 (0x21), region = 24 }
   0xf   : > { %s2143_s12 = scalar_select %p115_p7, %s2029_s22, %s117_s11  }
  0x13   : > { %258 = sbr.rel (!%p126_p5) target bundleno = 33 (0x21), region = 40  ;;  %s260_s13 = sand.u32 (%p126_p5), 1, %s2029_s22  }
  0x14   : > { %s1572_s14 = sshll.u32 (%p126_p5), %s2045_s26, 4  ;;  %s1571_s15 = sshll.u32 (%p126_p5), %s260_s13, 6 }
  0x15   : > { %s264_s16 = sadd.s32 (%p126_p5), %s2041_s25, %s1572_s14  ;;  %s262_s30 = scalar_lea.vmem (%p126_p5), [#allocation2], %s1571_s15 }
  0x16   : > { %s1573_s17 = sshll.u32 (%p126_p5), %s264_s16, 3 }
  0x17   : > { %s266_s20 = scalar_lea.vmem (%p126_p5), %s2617_s3, %s1573_s17 }
  0x18   : > { %v309_v0 = vld [vmem:[%s266_s20] sm:$0xff]  ;;  %v311_v1 = vld [vmem:[%s266_s20 + $0x10] sm:$0xff] }
  0x19   : > { %v313_v2 = vld [vmem:[%s266_s20 + $0x20] sm:$0xff]  ;;  %310 = vst [vmem:[%s262_s30] sm:$0xff] %v309_v0  ;;  %v315_v3 = vld [vmem:[%s266_s20 + $0x30] sm:$0xff] }
  0x1a   : > { %312 = vst [vmem:[%s262_s30 + $0x8] sm:$0xff] %v311_v1  ;;  %v317_v4 = vld [vmem:[%s266_s20 + $0x40] sm:$0xff]  ;;  %v319_v5 = vld [vmem:[%s266_s20 + $0x50] sm:$0xff] }
  0x1b   : > { %314 = vst [vmem:[%s262_s30 + $0x10] sm:$0xff] %v313_v2  ;;  %v321_v6 = vld [vmem:[%s266_s20 + $0x60] sm:$0xff]  ;;  %v323_v7 = vld [vmem:[%s266_s20 + $0x70] sm:$0xff] }
  0x1c   : > { %316 = vst [vmem:[%s262_s30 + $0x18] sm:$0xff] %v315_v3 }
  0x1d   : > { %318 = vst [vmem:[%s262_s30 + $0x20] sm:$0xff] %v317_v4 }
  0x1e   : > { %320 = vst [vmem:[%s262_s30 + $0x28] sm:$0xff] %v319_v5 }
  0x1f   : > { %322 = vst [vmem:[%s262_s30 + $0x30] sm:$0xff] %v321_v6 }
  0x20   : > { %324 = vst [vmem:[%s262_s30 + $0x38] sm:$0xff] %v323_v7 }
  0x21 PF: > { %p1574_p9 = scmp.ge.s32.totalorder %s2049_s27, 1  ;;  %p329_p10 = scmp.lt.s32.totalorder %s2049_s27, 5 }
  0x23   : > { %p330_p11 = pnand %p1574_p9, %p329_p10 }
  0x24   : > { %p384_p12 = scmp.lt.s32.totalorder (!%p330_p11), %s2037_s24, 1  ;;  %s1577_s14 = sshll.u32 (!%p330_p11), %s2033_s23, 4 }
  0x25   : > { %333 = sbr.rel (%p330_p11) target bundleno = 1028 (0x404), region = 78  ;;  %p386_p13 = scmp.lt.s32.totalorder (!%p330_p11), %s1577_s14, 31 }
  0x26   : > { %s336_s10 = sand.u32 (!%p330_p11), 1, %s2025_s21  }
  0x2a   : > { %s2156_s7 = scalar_select %p384_p12, %s2037_s24, 1  ;;  %vm603_vm0 = vcmask 523264  }
  0x2b   : > { %s2635_s14 = smov (!%p386_p13, %s1577_s14), 31  ;;  %s1781_s21 = sshll.u32 (%p2135_p6), %s2037_s24, 4 }
  0x2c   : > { %s1785_s9 = sshll.u32 %s2156_s7, 7  ;;  %s1578_s15 = sshll.u32 %s2156_s7, 5 }
  0x2d   : > { %s2164_s13 = scalar_lea.vmem %s2615_s1, %s1785_s9  ;;  %s389_s16 = sadd.s32 %s1578_s15, %s2635_s14 }
  0x2e   : > { %v1802_v8 = vld [vmem:[%s2164_s13 + $0x38] sm:$0xff]  ;;  %v1801_v12 = vld [vmem:[%s2164_s13 + $0x30] sm:$0xff]  ;;  %v1800_v16 = vld [vmem:[%s2164_s13 + $0x28] sm:$0xff]  ;;  %s1579_s17 = sshll.u32 %s389_s16, 2  ;;  %s2272_s11 = scalar_lea.vmem %s2616_s2, %s1785_s9 }
  0x2f   : > { %v1810_v9 = vld [vmem:[%s2164_s13 + $0x78] sm:$0xff]  ;;  %v650_v10 = vsel %vm603_vm0, %v1802_v8, 0  ;;  %v1809_v13 = vld [vmem:[%s2164_s13 + $0x70] sm:$0xff]  ;;  %v647_v14 = vsel %vm603_vm0, %v1801_v12, 0  ;;  %v1808_v17 = vld [vmem:[%s2164_s13 + $0x68] sm:$0xff]  ;;  %v644_v18 = vsel %vm603_vm0, %v1800_v16, 0  ;;  %s391_s20 = scalar_lea.vmem %s2614_s0, %s1579_s17 }
  0x30   : > { %v674_v11 = vsel %vm603_vm0, %v1810_v9, 0  ;;  %676 = vmatpush.bf16.xpose.msra.mxu0 %v650_v10  ;;  %v671_v15 = vsel %vm603_vm0, %v1809_v13, 0  ;;  %v668_v19 = vsel %vm603_vm0, %v1808_v17, 0  ;;  %v1799_v20 = vld [vmem:[%s2164_s13 + $0x20] sm:$0xff]  ;;  %v1798_v24 = vld [vmem:[%s2164_s13 + $0x18] sm:$0xff]  ;;  %v1797_v28 = vld [vmem:[%s2164_s13 + $0x10] sm:$0xff] }
  0x31   : > { %725 = vmatpush.bf16.xpose.msra.mxu1 %v674_v11  ;;  %v1807_v21 = vld [vmem:[%s2164_s13 + $0x60] sm:$0xff]  ;;  %v641_v22 = vsel %vm603_vm0, %v1799_v20, 0  ;;  %v1806_v25 = vld [vmem:[%s2164_s13 + $0x58] sm:$0xff]  ;;  %v638_v26 = vsel %vm603_vm0, %v1798_v24, 0  ;;  %v1805_v29 = vld [vmem:[%s2164_s13 + $0x50] sm:$0xff]  ;;  %v635_v30 = vsel %vm603_vm0, %v1797_v28, 0 }
  0x32   : > { %v665_v23 = vsel %vm603_vm0, %v1807_v21, 0  ;;  %v662_v27 = vsel %vm603_vm0, %v1806_v25, 0  ;;  %v659_v31 = vsel %vm603_vm0, %v1805_v29, 0  ;;  %v1796_v32 = vld [vmem:[%s2164_s13 + $0x8] sm:$0xff]  ;;  %v1795_v36 = vld [vmem:[%s2164_s13] sm:$0xff]  ;;  %v1789_v42 = vld [vmem:[%s391_s20 + $0x10] sm:$0xff] }
  0x33   : > { %v1804_v33 = vld [vmem:[%s2164_s13 + $0x48] sm:$0xff]  ;;  %v632_v34 = vsel %vm603_vm0, %v1796_v32, 0  ;;  %v1803_v37 = vld [vmem:[%s2164_s13 + $0x40] sm:$0xff]  ;;  %v629_v38 = vsel %vm603_vm0, %v1795_v36, 0  ;;  %v1790_v43 = vld [vmem:[%s391_s20 + $0x18] sm:$0xff]  ;;  %s1389_s13 = sadd.s32 (%p2135_p6), %s2033_s23, %s1781_s21 }
  0x34   : > { %v656_v35 = vsel %vm603_vm0, %v1804_v33, 0  ;;  %v653_v39 = vsel %vm603_vm0, %v1803_v37, 0  ;;  %v1787_v40 = vld [vmem:[%s391_s20] sm:$0xff]  ;;  %v1788_v41 = vld [vmem:[%s391_s20 + $0x8] sm:$0xff]  ;;  %v1793_v46 = vld [vmem:[%s391_s20 + $0x30] sm:$0xff]  ;;  %s1782_s14 = sshll.u32 (%p2135_p6), %s1389_s13, 3 }
  0x35   : > { %v1791_v44 = vld [vmem:[%s391_s20 + $0x20] sm:$0xff]  ;;  %v1792_v45 = vld [vmem:[%s391_s20 + $0x28] sm:$0xff]  ;;  %v1794_v47 = vld [vmem:[%s391_s20 + $0x38] sm:$0xff]  ;;  %s1391_s8 = scalar_lea.vmem (%p2135_p6), %s2620_s6, %s1782_s14 }
  0x36   : > { %v1818_v8 = vld [vmem:[%s2272_s11 + $0x38] sm:$0xff]  ;;  %v1817_v9 = vld [vmem:[%s2272_s11 + $0x30] sm:$0xff]  ;;  %v1816_v13 = vld [vmem:[%s2272_s11 + $0x28] sm:$0xff] }
  0x37   : > { %1078 = vmatpush.bf16.msra.mxu2 %v1818_v8  ;;  %1831 = vmatpush.bf16.msra.mxu3 %v1818_v8  ;;  %v1815_v16 = vld [vmem:[%s2272_s11 + $0x20] sm:$0xff]  ;;  %v1814_v17 = vld [vmem:[%s2272_s11 + $0x18] sm:$0xff]  ;;  %v1813_v20 = vld [vmem:[%s2272_s11 + $0x10] sm:$0xff] }
  0x38   : > { %677 = vmatpush.bf16.xpose.msra.mxu0 %v647_v14 }
  0x39   : > { %726 = vmatpush.bf16.xpose.msra.mxu1 %v671_v15 }
  0x3b   : > { %1079 = vmatpush.bf16.msra.mxu2 %v1817_v9  ;;  %1832 = vmatpush.bf16.msra.mxu3 %v1817_v9 }
  0x3f   : > { %1080 = vmatpush.bf16.msra.mxu2 %v1816_v13  ;;  %1833 = vmatpush.bf16.msra.mxu3 %v1816_v13  ;;  %v1825_v13 = vld [vmem:[%s2272_s11 + $0x70] sm:$0xff] }
  0x40   : > { %678 = vmatpush.bf16.xpose.msra.mxu0 %v644_v18 }
  0x41   : > { %727 = vmatpush.bf16.xpose.msra.mxu1 %v668_v19 }
  0x43   : > { %1081 = vmatpush.bf16.msra.mxu2 %v1815_v16  ;;  %1834 = vmatpush.bf16.msra.mxu3 %v1815_v16 }
  0x47   : > { %1082 = vmatpush.bf16.msra.mxu2 %v1814_v17  ;;  %1835 = vmatpush.bf16.msra.mxu3 %v1814_v17  ;;  %v1824_v17 = vld [vmem:[%s2272_s11 + $0x68] sm:$0xff] }
  0x48   : > { %679 = vmatpush.bf16.xpose.msra.mxu0 %v641_v22  ;;  %v1812_v22 = vld [vmem:[%s2272_s11 + $0x8] sm:$0xff] }
  0x49   : > { %728 = vmatpush.bf16.xpose.msra.mxu1 %v665_v23  ;;  %v1811_v23 = vld [vmem:[%s2272_s11] sm:$0xff] }
  0x4b   : > { %1083 = vmatpush.bf16.msra.mxu2 %v1813_v20  ;;  %1836 = vmatpush.bf16.msra.mxu3 %v1813_v20 }
  0x4f   : > { %1084 = vmatpush.bf16.msra.mxu2 %v1812_v22  ;;  %1837 = vmatpush.bf16.msra.mxu3 %v1812_v22 }
  0x50   : > { %680 = vmatpush.bf16.xpose.msra.mxu0 %v638_v26 }
  0x51   : > { %729 = vmatpush.bf16.xpose.msra.mxu1 %v662_v27 }
  0x53   : > { %1085 = vmatpush.bf16.msra.mxu2 %v1811_v23  ;;  %1838 = vmatpush.bf16.msra.mxu3 %v1811_v23 }
  0x58   : > { %681 = vmatpush.bf16.xpose.msra.mxu0 %v635_v30 }
  0x59   : > { %730 = vmatpush.bf16.xpose.msra.mxu1 %v659_v31 }
  0x60   : > { %682 = vmatpush.bf16.xpose.msra.mxu0 %v632_v34 }
  0x61   : > { %731 = vmatpush.bf16.xpose.msra.mxu1 %v656_v35 }
  0x68   : > { %683 = vmatpush.bf16.xpose.msra.mxu0 %v629_v38 }
  0x69   : > { %732 = vmatpush.bf16.xpose.msra.mxu1 %v653_v39 }
  0x6f   : > { %1680 = vmatmul.msk.bf16.vlgmr.msra.gmra.mxu0 %vm603_vm0, %v1787_v40 }
  0x70   : > { %1688 = vmatmul.msk.bf16.vlgmr.msra.gmra.mxu1 %vm603_vm0, %v1787_v40 }
  0x7f   : > { %1681 = vmatmul.msk.bf16.gmra.mxu0 %vm603_vm0, %v1788_v41 }
  0x80   : > { %1689 = vmatmul.msk.bf16.gmra.mxu1 %vm603_vm0, %v1788_v41 }
  0x8f   : > { %1682 = vmatmul.msk.bf16.gmra.mxu0 %vm603_vm0, %v1789_v42 }
  0x90   : > { %1690 = vmatmul.msk.bf16.gmra.mxu1 %vm603_vm0, %v1789_v42 }
  0x9f   : > { %1683 = vmatmul.msk.bf16.gmra.mxu0 %vm603_vm0, %v1790_v43 }
  0xa0   : > { %1691 = vmatmul.msk.bf16.gmra.mxu1 %vm603_vm0, %v1790_v43 }
  0xaf   : > { %1684 = vmatmul.msk.bf16.gmra.mxu0 %vm603_vm0, %v1791_v44 }
  0xb0   : > { %1692 = vmatmul.msk.bf16.gmra.mxu1 %vm603_vm0, %v1791_v44 }
  0xbf   : > { %1685 = vmatmul.msk.bf16.gmra.mxu0 %vm603_vm0, %v1792_v45 }
  0xc0   : > { %1693 = vmatmul.msk.bf16.gmra.mxu1 %vm603_vm0, %v1792_v45 }
  0xcf   : > { %1686 = vmatmul.msk.bf16.gmra.mxu0 %vm603_vm0, %v1793_v46 }
  0xd0   : > { %1694 = vmatmul.msk.bf16.gmra.mxu1 %vm603_vm0, %v1793_v46 }
  0xdf   : > { %1687 = vmatmul.msk.bf16.gmra.mxu0 %vm603_vm0, %v1794_v47 }
  0xe0   : > { %1695 = vmatmul.msk.bf16.gmra.mxu1 %vm603_vm0, %v1794_v47 }
  0xec   : > { %v2219_v48 = vpop.f32.mrf.mxu0 }
  0xed   : > { %v2221_v49 = vpop.f32.mrf.mxu1 }
  0xee   : > { %v774_v50 = vmax.f32 %v2219_v48, %v2221_v49 }
  0xf0   : > { %775 = vmax.xlane.f32.xlu2 %v774_v50 }
  0xf4   : > { %v2225_v51 = vpop.f32.mrf.mxu0 }
  0xf5   : > { %v2227_v52 = vpop.f32.mrf.mxu1 }
  0xf6   : > { %v777_v53 = vmax.f32 %v2225_v51, %v2227_v52 }
  0xf8   : > { %778 = vmax.xlane.f32.xlu2 %v777_v53 }
  0xfc   : > { %v2231_v54 = vpop.f32.mrf.mxu0 }
  0xfd   : > { %v2233_v55 = vpop.f32.mrf.mxu1 }
  0xfe   : > { %v780_v29 = vmax.f32 %v2231_v54, %v2233_v55 }
 0x104   : > { %v2235_v56 = vpop.f32.mrf.mxu0 }
 0x105   : > { %v2237_v57 = vpop.f32.mrf.mxu1 }
 0x106   : > { %v783_v47 = vmax.f32 %v2235_v56, %v2237_v57 }
 0x10c   : > { %v2239_v58 = vpop.f32.mrf.mxu0 }
 0x10d   : > { %v2241_v59 = vpop.f32.mrf.mxu1 }
 0x10e   : > { %v786_v60 = vmax.f32 %v2239_v58, %v2241_v59 }
 0x110   : > { %787 = vmax.xlane.f32.xlu2 %v786_v60 }
 0x114   : > { %v2245_v61 = vpop.f32.mrf.mxu0 }
 0x115   : > { %v2247_v62 = vpop.f32.mrf.mxu1 }
 0x116   : > { %v789_v39 = vmax.f32 %v2245_v61, %v2247_v62 }
 0x11c   : > { %v2249_v63 = vpop.f32.mrf.mxu0 }
 0x11d   : > { %v2251_v0 = vpop.f32.mrf.mxu1 }
 0x124   : > { %v2253_v1 = vpop.f32.mrf.mxu0 }
 0x125   : > { %v2255_v2 = vpop.f32.mrf.mxu1 }
 0x126   : > { %v795_v3 = vmax.f32 %v2253_v1, %v2255_v2 }
 0x128   : > { %796 = vmax.xlane.f32.xlu2 %v795_v3 }
 0x12c   : > { %v2259_v4 = vpop.f32.mrf.mxu0 }
 0x12d   : > { %v2261_v5 = vpop.f32.mrf.mxu1 }
 0x12e   : > { %v798_v46 = vmax.f32 %v2259_v4, %v2261_v5 }
 0x134   : > { %v2263_v6 = vpop.f32.mrf.mxu0 }
 0x135   : > { %v2265_v7 = vpop.f32.mrf.mxu1 }
 0x136   : > { %v801_v9 = vmax.f32 %v2263_v6, %v2265_v7 }
 0x13c   : > { %v2276_v10 = vpop.f32.mrf.mxu0 }
 0x13d   : > { %v2278_v11 = vpop.f32.mrf.mxu1 }
 0x13e   : > { %v804_v12 = vmax.f32 %v2276_v10, %v2278_v11 }
 0x140   : > { %805 = vmax.xlane.f32.xlu2 %v804_v12  ;;  %v1826_v12 = vld [vmem:[%s2272_s11 + $0x78] sm:$0xff] }
 0x141   : > { %1127 = vmatpush.bf16.msrb.mxu3 %v1826_v12 }
 0x144   : > { %v2283_v14 = vpop.f32.mrf.mxu0 }
 0x145   : > { %v2285_v15 = vpop.f32.mrf.mxu1  ;;  %1128 = vmatpush.bf16.msrb.mxu3 %v1825_v13 }
 0x149   : > { %1129 = vmatpush.bf16.msrb.mxu3 %v1824_v17 }
 0x14c   : > { %v2289_v18 = vpop.f32.mrf.mxu0 }
 0x14d   : > { %v2291_v19 = vpop.f32.mrf.mxu1 }
 0x14e   : > { %v810_v21 = vmax.f32 %v2289_v18, %v2291_v19 }
 0x150   : > { %811 = vmax.xlane.f32.xlu0 %v810_v21 }
 0x154   : > { %v2298_v24 = vpop.f32.mrf.mxu0 }
 0x155   : > { %v2300_v25 = vpop.f32.mrf.mxu1 }
 0x156   : > { %v813_v26 = vmax.f32 %v2298_v24, %v2300_v25 }
 0x158   : > { %814 = vmax.xlane.f32.xlu0 %v813_v26  ;;  %v1823_v26 = vld [vmem:[%s2272_s11 + $0x60] sm:$0xff] }
 0x159   : > { %1130 = vmatpush.bf16.msrb.mxu3 %v1823_v26 }
 0x15c   : > { %v2304_v27 = vpop.f32.mrf.mxu0 }
 0x15d   : > { %v2306_v28 = vpop.f32.mrf.mxu1 }
 0x15e   : > { %v816_v30 = vmax.f32 %v2304_v27, %v2306_v28 }
 0x160   : > { %781 = vmax.xlane.f32.xlu0 %v780_v29  ;;  %817 = vmax.xlane.f32.xlu1 %v816_v30 }
 0x163   : > { %v776_v31 = vpop.xlane.xlu2 %775 }
 0x164   : > { %v822_v32 = vsub.f32 %v2219_v48, %v776_v31  ;;  %v823_v33 = vsub.f32 %v2221_v49, %v776_v31  ;;  %v2314_v34 = vpop.f32.mrf.mxu0  ;;  %v1822_v31 = vld [vmem:[%s2272_s11 + $0x58] sm:$0xff] }
 0x165   : > { %v2316_v35 = vpop.f32.mrf.mxu1  ;;  %1131 = vmatpush.bf16.msrb.mxu3 %v1822_v31 }
 0x166   : > { %v854_v36 = vmul.f32 1.442695, %v822_v32  ;;  %v856_v37 = vmul.f32 1.442695, %v823_v33  ;;  %v819_v38 = vmax.f32 %v2314_v34, %v2316_v35 }
 0x168   : > { %1899 = vpow2.f32 %v854_v36  ;;  %790 = vmax.xlane.f32.xlu0 %v789_v39  ;;  %820 = vmax.xlane.f32.xlu1 %v819_v38  ;;  %v1821_v38 = vld [vmem:[%s2272_s11 + $0x50] sm:$0xff] }
 0x169   : > { %1901 = vpow2.f32 %v856_v37  ;;  %1132 = vmatpush.bf16.msrb.mxu3 %v1821_v38 }
 0x16b   : > { %v779_v40 = vpop.xlane.xlu2 %778 }
 0x16c   : > { %v824_v41 = vsub.f32 %v2225_v51, %v779_v40  ;;  %v825_v42 = vsub.f32 %v2227_v52, %v779_v40  ;;  %v807_v51 = vmax.f32 %v2283_v14, %v2285_v15  ;;  %v792_v52 = vmax.f32 %v2249_v63, %v2251_v0 }
 0x16e   : > { %v1900_v43 = vpop.eup %1899  ;;  %v858_v44 = vmul.f32 1.442695, %v824_v41  ;;  %v860_v45 = vmul.f32 1.442695, %v825_v42  ;;  %v1820_v42 = vld [vmem:[%s2272_s11 + $0x48] sm:$0xff] }
 0x16f   : > { %v2328_v48 = vpop.eup %1901  ;;  %1133 = vmatpush.bf16.msrb.mxu3 %v1820_v42 }
 0x170   : > { %1903 = vpow2.f32 %v858_v44  ;;  %799 = vmax.xlane.f32.xlu0 %v798_v46  ;;  %784 = vmax.xlane.f32.xlu1 %v783_v47  ;;  %v2331_v49 = vadd.f32 %v2328_v48, %v1900_v43 }
 0x171   : > { %1905 = vpow2.f32 %v860_v45 }
 0x176   : > { %v1904_v50 = vpop.eup %1903 }
 0x177   : > { %v2337_v53 = vpop.eup %1905  ;;  %v966_v60 = vpack.c.bf16 %v1904_v50, %v1900_v43 }
 0x178   : > { %808 = vmax.xlane.f32.xlu0 %v807_v51  ;;  %793 = vmax.xlane.f32.xlu1 %v792_v52  ;;  %v967_v3 = vpack.c.bf16 %v2337_v53, %v2328_v48  ;;  %v2342_v8 = vadd.f32 %v2337_v53, %v1904_v50  ;;  %v1819_v51 = vld [vmem:[%s2272_s11 + $0x40] sm:$0xff]  ;;  %s1575_s11 = sshll.u32 %s336_s10, 6 }
 0x179   : > { %1086 = vmatmul.bf16.vlgmr.msra.gmra.mxu2 %v966_v60  ;;  %1134 = vmatpush.bf16.msrb.mxu3 %v1819_v51  ;;  %s2558_s7 = scalar_lea.vmem [#allocation2], %s1575_s11  ;;  %s2561_s9 = scalar_lea.vmem [#allocation3], %s1575_s11 }
 0x180   : > { %802 = vmax.xlane.f32.xlu1 %v801_v9 }
 0x183   : > { %v2352_v29 = vpop.xlane.xlu2 %787 }
 0x19b   : > { %v797_v40 = vpop.xlane.xlu2 %796 }
 0x19c   : > { %v837_v38 = vsub.f32 %v2255_v2, %v797_v40 }
 0x1b3   : > { %v806_v60 = vpop.xlane.xlu2 %805 }
 0x1b4   : > { %v842_v13 = vsub.f32 %v2276_v10, %v806_v60 }
 0x1b6   : > { %v894_v26 = vmul.f32 1.442695, %v842_v13 }
 0x1c3   : > { %v812_v16 = vpop.xlane.xlu0 %811 }
 0x1c4   : > { %v846_v20 = vsub.f32 %v2289_v18, %v812_v16  ;;  %v847_v21 = vsub.f32 %v2291_v19, %v812_v16  ;;  %v843_v16 = vsub.f32 %v2278_v11, %v806_v60 }
 0x1c6   : > { %v902_v22 = vmul.f32 1.442695, %v846_v20  ;;  %v904_v23 = vmul.f32 1.442695, %v847_v21 }
 0x1c8   : > { %1907 = vpow2.f32 %v902_v22 }
 0x1c9   : > { %1909 = vpow2.f32 %v904_v23 }
 0x1cb   : > { %v815_v30 = vpop.xlane.xlu0 %814 }
 0x1cc   : > { %v848_v32 = vsub.f32 %v2298_v24, %v815_v30  ;;  %v849_v33 = vsub.f32 %v2300_v25, %v815_v30  ;;  %v896_v30 = vmul.f32 1.442695, %v843_v16 }
 0x1ce   : > { %v1908_v18 = vpop.eup %1907  ;;  %v906_v19 = vmul.f32 1.442695, %v848_v32  ;;  %v908_v36 = vmul.f32 1.442695, %v849_v33  ;;  %v836_v33 = vsub.f32 %v2253_v1, %v797_v40 }
 0x1cf   : > { %v2357_v37 = vpop.eup %1909 }
 0x1d0   : > { %1911 = vpow2.f32 %v906_v19  ;;  %v954_v39 = vadd.f32 %v2357_v37, %v1908_v18 }
 0x1d1   : > { %1913 = vpow2.f32 %v908_v36 }
 0x1d2   : > { %955 = vadd.xlane.f32.xlu0 %v954_v39 }
 0x1d3   : > { %v2361_v41 = vpop.xlane.xlu0 %781  ;;  %v818_v24 = vpop.xlane.xlu1 %817 }
 0x1d4   : > { %v850_v25 = vsub.f32 %v2304_v27, %v818_v24  ;;  %v851_v43 = vsub.f32 %v2306_v28, %v818_v24  ;;  %v826_v20 = vsub.f32 %v2231_v54, %v2361_v41 }
 0x1d6   : > { %v1912_v44 = vpop.eup %1911  ;;  %v910_v45 = vmul.f32 1.442695, %v850_v25  ;;  %v912_v47 = vmul.f32 1.442695, %v851_v43  ;;  %v884_v43 = vmul.f32 1.442695, %v837_v38 }
 0x1d7   : > { %v2366_v46 = vpop.eup %1913  ;;  %v978_v50 = vpack.c.bf16 %v1912_v44, %v1908_v18 }
 0x1d8   : > { %v979_v52 = vpack.c.bf16 %v2366_v46, %v2357_v37  ;;  %1915 = vpow2.f32 %v910_v45 }
 0x1d9   : > { %1116 = vmatmul.bf16.vlgmr.msra.gmra.mxu3 %v978_v50  ;;  %1917 = vpow2.f32 %v912_v47  ;;  %v827_v47 = vsub.f32 %v2233_v55, %v2361_v41 }
 0x1db   : > { %v2371_v9 = vpop.xlane.xlu0 %790  ;;  %v821_v27 = vpop.xlane.xlu1 %820 }
 0x1dc   : > { %v852_v28 = vsub.f32 %v2314_v34, %v821_v27  ;;  %v853_v12 = vsub.f32 %v2316_v35, %v821_v27  ;;  %v862_v34 = vmul.f32 1.442695, %v826_v20  ;;  %v832_v60 = vsub.f32 %v2245_v61, %v2371_v9 }
 0x1de   : > { %v914_v17 = vmul.f32 1.442695, %v852_v28  ;;  %v916_v21 = vmul.f32 1.442695, %v853_v12  ;;  %v1916_v22 = vpop.eup %1915  ;;  %v874_v61 = vmul.f32 1.442695, %v832_v60 }
 0x1df   : > { %v2379_v23 = vpop.eup %1917 }
 0x1e0   : > { %1919 = vpow2.f32 %v914_v17  ;;  %v960_v31 = vadd.f32 %v2379_v23, %v1916_v22 }
 0x1e1   : > { %1921 = vpow2.f32 %v916_v21 }
 0x1e2   : > { %961 = vadd.xlane.f32.xlu1 %v960_v31  ;;  %1923 = vpow2.f32 %v894_v26 }
 0x1e3   : > { %v800_v35 = vpop.xlane.xlu0 %799  ;;  %v2382_v32 = vpop.xlane.xlu1 %784  ;;  %1925 = vpow2.f32 %v896_v30 }
 0x1e4   : > { %v838_v10 = vsub.f32 %v2259_v4, %v800_v35  ;;  %v839_v11 = vsub.f32 %v2261_v5, %v800_v35  ;;  %v828_v54 = vsub.f32 %v2235_v56, %v2382_v32  ;;  %1927 = vpow2.f32 %v862_v34 }
 0x1e5   : > { %v882_v4 = vmul.f32 1.442695, %v836_v33  ;;  %v957_v56 = vadd.f32 %v2366_v46, %v1912_v44  ;;  %v831_v35 = vsub.f32 %v2241_v59, %v2352_v29 }
 0x1e6   : > { %v886_v18 = vmul.f32 1.442695, %v838_v10  ;;  %v888_v19 = vmul.f32 1.442695, %v839_v11  ;;  %v866_v36 = vmul.f32 1.442695, %v828_v54  ;;  %v1920_v39 = vpop.eup %1919 }
 0x1e7   : > { %v2390_v24 = vpop.eup %1921  ;;  %v980_v5 = vpack.c.bf16 %v1920_v39, %v1916_v22 }
 0x1e8   : > { %1929 = vpow2.f32 %v886_v18  ;;  %v963_v1 = vadd.f32 %v2390_v24, %v1920_v39  ;;  %v981_v42 = vpack.c.bf16 %v2390_v24, %v2379_v23  ;;  %v2396_v25 = vpop.eup %1923  ;;  %v833_v18 = vsub.f32 %v2247_v62, %v2371_v9 }
 0x1e9   : > { %1931 = vpow2.f32 %v888_v19  ;;  %1121 = vmatmul.bf16.gmra.mxu3 %v980_v5  ;;  %v2398_v45 = vpop.eup %1925 }
 0x1ea   : > { %1933 = vpow2.f32 %v866_v36  ;;  %958 = vadd.xlane.f32.xlu1 %v957_v56  ;;  %964 = vadd.xlane.f32.xlu2 %v963_v1  ;;  %v2404_v51 = vpop.eup %1927  ;;  %v948_v21 = vadd.f32 %v2398_v45, %v2396_v25  ;;  %v876_v39 = vmul.f32 1.442695, %v833_v18 }
 0x1eb   : > { %v809_v2 = vpop.xlane.xlu0 %808  ;;  %v794_v40 = vpop.xlane.xlu1 %793  ;;  %1935 = vpow2.f32 %v882_v4 }
 0x1ec   : > { %v844_v44 = vsub.f32 %v2283_v14, %v809_v2  ;;  %v845_v50 = vsub.f32 %v2285_v15, %v809_v2  ;;  %v834_v13 = vsub.f32 %v2249_v63, %v794_v40  ;;  %1937 = vpow2.f32 %v884_v43 }
 0x1ed   : > { %v835_v55 = vsub.f32 %v2251_v0, %v794_v40  ;;  %v864_v15 = vmul.f32 1.442695, %v827_v47  ;;  %v830_v63 = vsub.f32 %v2239_v58, %v2352_v29  ;;  %v872_v29 = vmul.f32 1.442695, %v831_v35 }
 0x1ee   : > { %v2408_v27 = vpop.eup %1929  ;;  %v898_v28 = vmul.f32 1.442695, %v844_v44  ;;  %v900_v12 = vmul.f32 1.442695, %v845_v50  ;;  %v878_v20 = vmul.f32 1.442695, %v834_v13 }
 0x1ef   : > { %v2411_v16 = vpop.eup %1931  ;;  %v880_v0 = vmul.f32 1.442695, %v835_v55  ;;  %v870_v10 = vmul.f32 1.442695, %v830_v63 }
 0x1f0   : > { %v2414_v14 = vpop.eup %1933  ;;  %1939 = vpow2.f32 %v898_v28  ;;  %v942_v41 = vadd.f32 %v2411_v16, %v2408_v27 }
 0x1f1   : > { %1941 = vpow2.f32 %v900_v12  ;;  %v968_v17 = vpack.c.bf16 %v2414_v14, %v2404_v51  ;;  %v1936_v26 = vpop.eup %1935 }
 0x1f2   : > { %1943 = vpow2.f32 %v864_v15  ;;  %943 = vadd.xlane.f32.xlu1 %v942_v41  ;;  %949 = vadd.xlane.f32.xlu2 %v948_v21  ;;  %v1938_v34 = vpop.eup %1937 }
 0x1f3   : > { %1091 = vmatmul.bf16.gmra.mxu2 %v968_v17  ;;  %v803_v22 = vpop.xlane.xlu1 %802  ;;  %1945 = vpow2.f32 %v874_v61  ;;  %v939_v36 = vadd.f32 %v1938_v34, %v1936_v26 }
 0x1f4   : > { %v840_v30 = vsub.f32 %v2263_v6, %v803_v22  ;;  %v841_v31 = vsub.f32 %v2265_v7, %v803_v22  ;;  %1947 = vpow2.f32 %v878_v20  ;;  %v829_v6 = vsub.f32 %v2237_v57, %v2382_v32 }
 0x1f5   : > { %1949 = vpow2.f32 %v880_v0 }
 0x1f6   : > { %v1940_v58 = vpop.eup %1939  ;;  %v890_v11 = vmul.f32 1.442695, %v840_v30  ;;  %v892_v54 = vmul.f32 1.442695, %v841_v31  ;;  %v868_v9 = vmul.f32 1.442695, %v829_v6 }
 0x1f7   : > { %v1942_v33 = vpop.eup %1941  ;;  %v976_v12 = vpack.c.bf16 %v1940_v58, %v2396_v25 }
 0x1f8   : > { %1951 = vpow2.f32 %v890_v11  ;;  %v951_v7 = vadd.f32 %v1942_v33, %v1940_v58  ;;  %v977_v19 = vpack.c.bf16 %v1942_v33, %v2398_v45  ;;  %v1944_v59 = vpop.eup %1943 }
 0x1f9   : > { %1953 = vpow2.f32 %v892_v54  ;;  %v1946_v38 = vpop.eup %1945  ;;  %1135 = vmatmul.bf16.vlgmr.msrb.gmra.mxu3 %v967_v3  ;;  %v924_v2 = vadd.f32 %v1944_v59, %v2404_v51 }
 0x1fa   : > { %1955 = vpow2.f32 %v870_v10  ;;  %952 = vadd.xlane.f32.xlu0 %v951_v7  ;;  %v1948_v62 = vpop.eup %1947  ;;  %940 = vadd.xlane.f32.xlu1 %v939_v36 }
 0x1fb   : > { %v1950_v57 = vpop.eup %1949  ;;  %1957 = vpow2.f32 %v872_v29  ;;  %v972_v50 = vpack.c.bf16 %v1936_v26, %v1948_v62 }
 0x1fc   : > { %1959 = vpow2.f32 %v876_v39  ;;  %v936_v56 = vadd.f32 %v1950_v57, %v1948_v62  ;;  %v973_v28 = vpack.c.bf16 %v1938_v34, %v1950_v57  ;;  %v1087_v37 = vpop.f32.mrf.mxu2 }
 0x1fd   : > { %1961 = vpow2.f32 %v868_v9 }
 0x1fe   : > { %v1952_v32 = vpop.eup %1951 }
 0x1ff   : > { %v1954_v4 = vpop.eup %1953  ;;  %v974_v60 = vpack.c.bf16 %v1952_v32, %v2408_v27 }
 0x200   : > { %v1956_v5 = vpop.eup %1955  ;;  %v945_v1 = vadd.f32 %v1954_v4, %v1952_v32  ;;  %v975_v13 = vpack.c.bf16 %v1954_v4, %v2411_v16 }
 0x201   : > { %v970_v43 = vpack.c.bf16 %v1946_v38, %v1956_v5  ;;  %v1958_v48 = vpop.eup %1957 }
 0x202   : > { %937 = vadd.xlane.f32.xlu0 %v936_v56  ;;  %946 = vadd.xlane.f32.xlu2 %v945_v1  ;;  %v1960_v53 = vpop.eup %1959  ;;  %v930_v45 = vadd.f32 %v1958_v48, %v1956_v5 }
 0x203   : > { %1096 = vmatmul.bf16.gmra.mxu2 %v970_v43  ;;  %925 = vadd.xlane.f32.xlu1 %v924_v2  ;;  %v1962_v3 = vpop.eup %1961  ;;  %v933_v40 = vadd.f32 %v1960_v53, %v1946_v38  ;;  %v971_v51 = vpack.c.bf16 %v1960_v53, %v1958_v48 }
 0x204   : > { %v969_v47 = vpack.c.bf16 %v1962_v3, %v1944_v59  ;;  %v927_v44 = vadd.f32 %v1962_v3, %v2414_v14  ;;  %v1089_v63 = vpop.f32.mrf.mxu2 }
 0x209   : > { %1140 = vmatmul.bf16.gmra.mxu3 %v969_v47 }
 0x20a   : > { %934 = vadd.xlane.f32.xlu0 %v933_v40  ;;  %931 = vadd.xlane.f32.xlu2 %v930_v45 }
 0x20b   : > { %922 = vadd.xlane.f32.xlu1 %v2342_v8 }
 0x212   : > { %919 = vadd.xlane.f32.xlu0 %v2331_v49  ;;  %928 = vadd.xlane.f32.xlu2 %v927_v44 }
 0x213   : > { %1101 = vmatmul.bf16.gmra.mxu2 %v972_v50 }
 0x219   : > { %1145 = vmatmul.bf16.gmra.mxu3 %v971_v51 }
 0x223   : > { %1106 = vmatmul.bf16.gmra.mxu2 %v974_v60 }
 0x229   : > { %1150 = vmatmul.bf16.gmra.mxu3 %v973_v28 }
 0x233   : > { %1111 = vmatmul.bf16.gmra.mxu2 %v976_v12 }
 0x239   : > { %1155 = vmatmul.bf16.gmra.mxu3 %v975_v13 }
 0x245   : > { %v2454_v14 = vpop.xlane.xlu0 %955 }
 0x249   : > { %1160 = vmatmul.bf16.gmra.mxu3 %v977_v19 }
 0x255   : > { %v2443_v8 = vpop.xlane.xlu1 %961 }
 0x259   : > { %1165 = vmatmul.bf16.gmra.mxu3 %v979_v52 }
 0x25c   : > { %v2448_v49 = vpop.f32.mrf.mxu3 }
 0x25d   : > { %v2450_v55 = vpop.xlane.xlu1 %958  ;;  %v2458_v15 = vpop.xlane.xlu2 %964 }
 0x264   : > { %v2452_v27 = vpop.f32.mrf.mxu3 }
 0x265   : > { %v2456_v25 = vpop.xlane.xlu1 %943  ;;  %v2467_v41 = vpop.xlane.xlu2 %949 }
 0x269   : > { %1170 = vmatmul.bf16.gmra.mxu3 %v981_v42 }
 0x26c   : > { %v2465_v46 = vpop.f32.mrf.mxu3 }
 0x26d   : > { %v2463_v16 = vpop.xlane.xlu0 %952  ;;  %v941_v52 = vpop.xlane.xlu1 %940 }
 0x274   : > { %v2469_v17 = vpop.f32.mrf.mxu3 }
 0x275   : > { %v938_v61 = vpop.xlane.xlu0 %937  ;;  %v947_v21 = vpop.xlane.xlu2 %946 }
 0x276   : > { %v926_v20 = vpop.xlane.xlu1 %925  ;;  %v1092_v26 = vpop.f32.mrf.mxu2 }
 0x27c   : > { %v1136_v22 = vpop.f32.mrf.mxu3 }
 0x27d   : > { %v935_v0 = vpop.xlane.xlu0 %934  ;;  %v932_v23 = vpop.xlane.xlu2 %931  ;;  %v1137_v58 = vadd.f32 %v1136_v22, %v1087_v37 }
 0x27e   : > { %v923_v30 = vpop.xlane.xlu1 %922  ;;  %v1094_v34 = vpop.f32.mrf.mxu2 }
 0x27f   : > { %1963 = vrcp.f32 %v923_v30 }
 0x284   : > { %v1138_v42 = vpop.f32.mrf.mxu3 }
 0x285   : > { %v920_v24 = vpop.xlane.xlu0 %919  ;;  %v1139_v31 = vadd.f32 %v1138_v42, %v1089_v63  ;;  %v1964_v35 = vpop.eup %1963 }
 0x286   : > { %1965 = vrcp.f32 %v920_v24  ;;  %v929_v18 = vpop.xlane.xlu2 %928  ;;  %v1097_v19 = vpop.f32.mrf.mxu2 }
 0x287   : > { %v2471_v11 = vmul.f32 %v1964_v35, %v1139_v31  ;;  %1967 = vrcp.f32 %v926_v20 }
 0x288   : > { %1969 = vrcp.f32 %v929_v18 }
 0x289   : > { %1971 = vrcp.f32 %v935_v0 }
 0x28a   : > { %1973 = vrcp.f32 %v932_v23 }
 0x28b   : > { %1975 = vrcp.f32 %v941_v52 }
 0x28c   : > { %v1966_v10 = vpop.eup %1965  ;;  %v1141_v33 = vpop.f32.mrf.mxu3  ;;  %1977 = vrcp.f32 %v938_v61 }
 0x28d   : > { %v2473_v54 = vmul.f32 %v1966_v10, %v1137_v58  ;;  %v1142_v6 = vadd.f32 %v1141_v33, %v1092_v26  ;;  %v1968_v29 = vpop.eup %1967  ;;  %1979 = vrcp.f32 %v2456_v25 }
 0x28e   : > { %v1970_v38 = vpop.eup %1969  ;;  %v1099_v57 = vpop.f32.mrf.mxu2  ;;  %1981 = vrcp.f32 %v947_v21 }
 0x28f   : > { %v1216_v7 = vpack.c.bf16 %v2471_v11, %v2473_v54  ;;  %v2477_v39 = vmul.f32 %v1968_v29, %v1142_v6  ;;  %v1972_v56 = vpop.eup %1971  ;;  %1983 = vrcp.f32 %v2443_v8  ;;  %v1224_v11 = vld [vmem:[%s2619_s5] sm:$0xff]  ;;  %v1828_v54 = vld [vmem:[%s2618_s4 + $0x8] sm:$0xff] }
 0x290   : > { %v1974_v43 = vpop.eup %1973  ;;  %1985 = vrcp.f32 %v2458_v15 }
 0x291   : > { %v1976_v50 = vpop.eup %1975  ;;  %1987 = vrcp.f32 %v2450_v55 }
 0x292   : > { %v1978_v60 = vpop.eup %1977  ;;  %1989 = vrcp.f32 %v2454_v14 }
 0x293   : > { %v1980_v26 = vpop.eup %1979  ;;  %1991 = vrcp.f32 %v2463_v16 }
 0x294   : > { %v1143_v59 = vpop.f32.mrf.mxu3  ;;  %v1982_v61 = vpop.eup %1981  ;;  %1993 = vrcp.f32 %v2467_v41 }
 0x295   : > { %v1144_v36 = vadd.f32 %v1143_v59, %v1094_v34  ;;  %v1984_v33 = vpop.eup %1983 }
 0x296   : > { %v1102_v2 = vpop.f32.mrf.mxu2  ;;  %v1986_v6 = vpop.eup %1985 }
 0x297   : > { %v2479_v62 = vmul.f32 %v1970_v38, %v1144_v36  ;;  %v1988_v15 = vpop.eup %1987 }
 0x298   : > { %v1990_v55 = vpop.eup %1989 }
 0x299   : > { %v1217_v9 = vpack.c.bf16 %v2479_v62, %v2477_v39  ;;  %v1827_v39 = vld [vmem:[%s2618_s4] sm:$0xff]  ;;  %v1226_v62 = vld [vmem:[%s2619_s5 + $0x10] sm:$0xff] }
 0x29c   : > { %v1146_v32 = vpop.f32.mrf.mxu3 }
 0x29d   : > { %v1147_v4 = vadd.f32 %v1146_v32, %v1097_v19 }
 0x29e   : > { %v1104_v45 = vpop.f32.mrf.mxu2 }
 0x29f   : > { %v2483_v48 = vmul.f32 %v1974_v43, %v1147_v4  ;;  %v1992_v4 = vpop.eup %1991 }
 0x2a4   : > { %v1148_v5 = vpop.f32.mrf.mxu3 }
 0x2a5   : > { %v1149_v1 = vadd.f32 %v1148_v5, %v1099_v57 }
 0x2a6   : > { %v1107_v37 = vpop.f32.mrf.mxu2 }
 0x2a7   : > { %v2485_v53 = vmul.f32 %v1972_v56, %v1149_v1  ;;  %v1994_v56 = vpop.eup %1993 }
 0x2a9   : > { %v1218_v3 = vpack.c.bf16 %v2485_v53, %v2483_v48  ;;  %v1225_v48 = vld [vmem:[%s2619_s5 + $0x8] sm:$0xff]  ;;  %v1231_v53 = vld [vmem:[%s2619_s5 + $0x38] sm:$0xff] }
 0x2ac   : > { %v1151_v40 = vpop.f32.mrf.mxu3 }
 0x2ad   : > { %v1152_v47 = vadd.f32 %v1151_v40, %v1102_v2  ;;  %v1311_v40 = vsel %vm603_vm0, %v1218_v3, 0  ;;  %v1228_v3 = vld [vmem:[%s2619_s5 + $0x20] sm:$0xff] }
 0x2ae   : > { %v1109_v0 = vpop.f32.mrf.mxu2 }
 0x2af   : > { %v1198_v28 = vmul.f32 %v1978_v60, %v1152_v47  ;;  %v2051_v47 = vmov 0   ;;  %v1830_v60 = vld [vmem:[%s2618_s4 + $0x18] sm:$0xff] }
 0x2b0   : > { %1897 = vset.pattern.permute.xlu0 %v2051_v47  ;;  %1898 = vset.pattern.permute.xlu1 %v2051_v47 }
 0x2b1   : > { %1896 = vset.pattern.permute.xlu2 %v2051_v47  ;;  %1239 = vperm.xlu0 %1897, %v1225_v48  }
 0x2b2   : > { %1244 = vperm.xlu1 %1898, %v1226_v62   ;;  %1234 = vperm.xlu2 %1896, %v1224_v11  }
 0x2b4   : > { %v1153_v44 = vpop.f32.mrf.mxu3 }
 0x2b5   : > { %v1154_v51 = vadd.f32 %v1153_v44, %v1104_v45  ;;  %v1308_v45 = vsel %vm603_vm0, %v1217_v9, 0  ;;  %v1305_v44 = vsel %vm603_vm0, %v1216_v7, 0  ;;  %v1229_v7 = vld [vmem:[%s2619_s5 + $0x28] sm:$0xff]  ;;  %v1227_v9 = vld [vmem:[%s2619_s5 + $0x18] sm:$0xff] }
 0x2b6   : > { %v1112_v21 = vpop.f32.mrf.mxu2 }
 0x2b7   : > { %v1199_v12 = vmul.f32 %v1976_v50, %v1154_v51  ;;  %v1829_v50 = vld [vmem:[%s2618_s4 + $0x10] sm:$0xff] }
 0x2b8   : > { %v1230_v51 = vld [vmem:[%s2619_s5 + $0x30] sm:$0xff] }
 0x2b9   : > { %v1219_v13 = vpack.c.bf16 %v1199_v12, %v1198_v28 }
 0x2ba   : > { %1259 = vperm.xlu1 %1898, %v1229_v7   ;;  %1249 = vperm.xlu2 %1896, %v1227_v9  }
 0x2bb   : > { %v1314_v41 = vsel %vm603_vm0, %v1219_v13, 0  ;;  %v1357_v13 = vld [vmem:[%s2558_s7] sm:$0xff] }
 0x2bc   : > { %v1156_v63 = vpop.f32.mrf.mxu3 }
 0x2bd   : > { %v1157_v20 = vadd.f32 %v1156_v63, %v1107_v37 }
 0x2bf   : > { %v1200_v30 = vmul.f32 %v1980_v26, %v1157_v20 }
 0x2c2   : > { %1269 = vperm.xlu1 %1898, %v1231_v53   ;;  %1254 = vperm.xlu2 %1896, %v1228_v3  }
 0x2c4   : > { %v1158_v22 = vpop.f32.mrf.mxu3 }
 0x2c5   : > { %v1159_v52 = vadd.f32 %v1158_v22, %v1109_v0  ;;  %v1358_v22 = vld [vmem:[%s2558_s7 + $0x8] sm:$0xff] }
 0x2c7   : > { %v1201_v23 = vmul.f32 %v1982_v61, %v1159_v52 }
 0x2c9   : > { %v1220_v24 = vpack.c.bf16 %v1201_v23, %v1200_v30  ;;  %v1359_v23 = vld [vmem:[%s2558_s7 + $0x10] sm:$0xff] }
 0x2ca   : > { %1264 = vperm.xlu2 %1896, %v1230_v51  }
 0x2cb   : > { %v1317_v16 = vsel %vm603_vm0, %v1220_v24, 0 }
 0x2cc   : > { %v1161_v42 = vpop.f32.mrf.mxu3 }
 0x2d4   : > { %v1163_v31 = vpop.f32.mrf.mxu3 }
 0x2dc   : > { %v1166_v34 = vpop.f32.mrf.mxu3 }
 0x2dd   : > { %v1167_v8 = vadd.f32 %v1166_v34, %v2448_v49 }
 0x2df   : > { %v1204_v57 = vmul.f32 %v1990_v55, %v1167_v8 }
 0x2e4   : > { %v1168_v35 = vpop.f32.mrf.mxu3 }
 0x2e5   : > { %v1169_v19 = vadd.f32 %v1168_v35, %v2452_v27  ;;  %v1162_v27 = vadd.f32 %v1161_v42, %v1112_v21  ;;  %v1360_v35 = vld [vmem:[%s2558_s7 + $0x18] sm:$0xff] }
 0x2e7   : > { %v1205_v38 = vmul.f32 %v1988_v15, %v1169_v19  ;;  %v1202_v1 = vmul.f32 %v1994_v56, %v1162_v27 }
 0x2e9   : > { %v1222_v32 = vpack.c.bf16 %v1205_v38, %v1204_v57 }
 0x2eb   : > { %v1323_v49 = vsel %vm603_vm0, %v1222_v32, 0  ;;  %v1364_v32 = vld [vmem:[%s2558_s7 + $0x38] sm:$0xff] }
 0x2ec   : > { %v1171_v58 = vpop.f32.mrf.mxu3 }
 0x2ed   : > { %v1172_v25 = vadd.f32 %v1171_v58, %v2465_v46 }
 0x2ef   : > { %v1206_v59 = vmul.f32 %v1984_v33, %v1172_v25  ;;  %v1361_v33 = vld [vmem:[%s2558_s7 + $0x20] sm:$0xff] }
 0x2f4   : > { %v1173_v10 = vpop.f32.mrf.mxu3 }
 0x2f5   : > { %v1174_v18 = vadd.f32 %v1173_v10, %v2469_v17  ;;  %v1114_v17 = vpop.f32.mrf.mxu2 }
 0x2f6   : > { %v1164_v14 = vadd.f32 %v1163_v31, %v1114_v17 }
 0x2f7   : > { %v1207_v29 = vmul.f32 %v1986_v6, %v1174_v18 }
 0x2f8   : > { %v1203_v5 = vmul.f32 %v1992_v4, %v1164_v14 }
 0x2f9   : > { %v1223_v36 = vpack.c.bf16 %v1207_v29, %v1206_v59  ;;  %v1362_v29 = vld [vmem:[%s2558_s7 + $0x28] sm:$0xff] }
 0x2fa   : > { %v1221_v43 = vpack.c.bf16 %v1203_v5, %v1202_v1 }
 0x2fb   : > { %v1326_v46 = vsel %vm603_vm0, %v1223_v36, 0 }
 0x2fc   : > { %1328 = vmatpush.bf16.xpose.msrb.mxu2 %v1326_v46  ;;  %v1320_v2 = vsel %vm603_vm0, %v1221_v43, 0  ;;  %v1363_v46 = vld [vmem:[%s2558_s7 + $0x30] sm:$0xff] }
 0x304   : > { %1329 = vmatpush.bf16.xpose.msrb.mxu2 %v1323_v49 }
 0x30c   : > { %1330 = vmatpush.bf16.xpose.msrb.mxu2 %v1320_v2  ;;  %v1235_v28 = vpop.permute.xlu2 %1234 }
 0x314   : > { %1331 = vmatpush.bf16.xpose.msrb.mxu2 %v1317_v16  ;;  %v1250_v31 = vpop.permute.xlu2 %1249 }
 0x31c   : > { %1332 = vmatpush.bf16.xpose.msrb.mxu2 %v1314_v41  ;;  %v1255_v10 = vpop.permute.xlu2 %1254 }
 0x323   : > { %v1240_v20 = vpop.permute.xlu0 %1239 }
 0x324   : > { %1333 = vmatpush.bf16.xpose.msrb.mxu2 %v1311_v40  ;;  %v1245_v61 = vpop.permute.xlu1 %1244  ;;  %v1265_v15 = vpop.permute.xlu2 %1264 }
 0x32c   : > { %1334 = vmatpush.bf16.xpose.msrb.mxu2 %v1308_v45  ;;  %v1260_v59 = vpop.permute.xlu1 %1259 }
 0x334   : > { %1335 = vmatpush.bf16.xpose.msrb.mxu2 %v1305_v44  ;;  %v1270_v14 = vpop.permute.xlu1 %1269 }
 0x33b   : > { %1776 = vmatmul.msk.bf16.vlgmr.msrb.gmra.mxu2 %vm603_vm0, %v1827_v39 }
 0x34b   : > { %1777 = vmatmul.msk.bf16.gmra.mxu2 %vm603_vm0, %v1828_v54 }
 0x35b   : > { %1778 = vmatmul.msk.bf16.gmra.mxu2 %vm603_vm0, %v1829_v50 }
 0x36b   : > { %1779 = vmatmul.msk.bf16.gmra.mxu2 %vm603_vm0, %v1830_v60 }
 0x3be   : > { %v1337_v12 = vpop.f32.mrf.mxu2 }
 0x3bf   : > { %v1338_v37 = vadd.f32 %v1337_v12, %v1235_v28 }
 0x3c1   : > { %v1365_v63 = vadd.f32 %v1357_v13, %v1338_v37 }
 0x3c3   : > { %1373 = vst [vmem:[%s2561_s9] sm:$0xff] %v1365_v63 }
 0x3c6   : > { %v1339_v0 = vpop.f32.mrf.mxu2 }
 0x3c7   : > { %v1340_v26 = vadd.f32 %v1339_v0, %v1240_v20 }
 0x3c9   : > { %v1366_v52 = vadd.f32 %v1358_v22, %v1340_v26 }
 0x3ca   : > { %v1434_v5 = vld [vmem:[%s2561_s9] sm:$0xff] (%p2135_p6) }
 0x3cb   : > { %1374 = vst [vmem:[%s2561_s9 + $0x8] sm:$0xff] %v1366_v52 }
 0x3cc   : > { %1435 = vst [vmem:[%s1391_s8] sm:$0xff] (%p2135_p6), %v1434_v5 }
 0x3ce   : > { %v1342_v30 = vpop.f32.mrf.mxu2 }
 0x3cf   : > { %v1343_v24 = vadd.f32 %v1342_v30, %v1245_v61 }
 0x3d1   : > { %v1367_v42 = vadd.f32 %v1359_v23, %v1343_v24 }
 0x3d2   : > { %v1436_v49 = vld [vmem:[%s2561_s9 + $0x8] sm:$0xff] (%p2135_p6) }
 0x3d3   : > { %1375 = vst [vmem:[%s2561_s9 + $0x10] sm:$0xff] %v1367_v42 }
 0x3d4   : > { %1437 = vst [vmem:[%s1391_s8 + $0x10] sm:$0xff] (%p2135_p6), %v1436_v49 }
 0x3d6   : > { %v1344_v34 = vpop.f32.mrf.mxu2 }
 0x3d7   : > { %v1345_v58 = vadd.f32 %v1344_v34, %v1250_v31 }
 0x3d9   : > { %v1368_v25 = vadd.f32 %v1360_v35, %v1345_v58 }
 0x3da   : > { %v1438_v56 = vld [vmem:[%s2561_s9 + $0x10] sm:$0xff] (%p2135_p6) }
 0x3db   : > { %1376 = vst [vmem:[%s2561_s9 + $0x18] sm:$0xff] %v1368_v25 }
 0x3dc   : > { %1439 = vst [vmem:[%s1391_s8 + $0x20] sm:$0xff] (%p2135_p6), %v1438_v56 }
 0x3de   : > { %v1347_v21 = vpop.f32.mrf.mxu2 }
 0x3df   : > { %v1348_v18 = vadd.f32 %v1347_v21, %v1255_v10 }
 0x3e1   : > { %v1369_v6 = vadd.f32 %v1361_v33, %v1348_v18 }
 0x3e2   : > { %v1440_v1 = vld [vmem:[%s2561_s9 + $0x18] sm:$0xff] (%p2135_p6) }
 0x3e3   : > { %1377 = vst [vmem:[%s2561_s9 + $0x20] sm:$0xff] %v1369_v6 }
 0x3e4   : > { %1441 = vst [vmem:[%s1391_s8 + $0x30] sm:$0xff] (%p2135_p6), %v1440_v1 }
 0x3e6   : > { %v1349_v19 = vpop.f32.mrf.mxu2 }
 0x3e7   : > { %v1350_v8 = vadd.f32 %v1349_v19, %v1260_v59 }
 0x3e9   : > { %v1370_v36 = vadd.f32 %v1362_v29, %v1350_v8 }
 0x3ea   : > { %v1442_v43 = vld [vmem:[%s2561_s9 + $0x20] sm:$0xff] (%p2135_p6) }
 0x3eb   : > { %1378 = vst [vmem:[%s2561_s9 + $0x28] sm:$0xff] %v1370_v36 }
 0x3ec   : > { %1443 = vst [vmem:[%s1391_s8 + $0x40] sm:$0xff] (%p2135_p6), %v1442_v43 }
 0x3ee   : > { %v1352_v38 = vpop.f32.mrf.mxu2 }
 0x3ef   : > { %v1353_v55 = vadd.f32 %v1352_v38, %v1265_v15 }
 0x3f1   : > { %v1371_v57 = vadd.f32 %v1363_v46, %v1353_v55 }
 0x3f2   : > { %v1444_v2 = vld [vmem:[%s2561_s9 + $0x28] sm:$0xff] (%p2135_p6) }
 0x3f3   : > { %1379 = vst [vmem:[%s2561_s9 + $0x30] sm:$0xff] %v1371_v57 }
 0x3f4   : > { %1445 = vst [vmem:[%s1391_s8 + $0x50] sm:$0xff] (%p2135_p6), %v1444_v2 }
 0x3f6   : > { %v1354_v17 = vpop.f32.mrf.mxu2 }
 0x3f7   : > { %v1355_v27 = vadd.f32 %v1354_v17, %v1270_v14  ;;  %1387 = sbr.rel (!%p2135_p6) target bundleno = 1028 (0x404), region = 86 }
 0x3f9   : > { %v1372_v4 = vadd.f32 %v1364_v32, %v1355_v27 }
 0x3fa   : > { %v1446_v16 = vld [vmem:[%s2561_s9 + $0x30] sm:$0xff] (%p2135_p6) }
 0x3fb   : > { %1380 = vst [vmem:[%s2561_s9 + $0x38] sm:$0xff] %v1372_v4 }
 0x3fc   : > { %1447 = vst [vmem:[%s1391_s8 + $0x60] sm:$0xff] %v1446_v16 }
 0x402   : > { %v1448_v41 = vld [vmem:[%s2561_s9 + $0x38] sm:$0xff] }
 0x403   : > { %1449 = vst [vmem:[%s1391_s8 + $0x70] sm:$0xff] %v1448_v41 }
 0x404 PF: > { %s16_s27 = sadd.s32 1, %s2049_s27   ;;  %s2622_s21 = smov %s2029_s22 }
 0x405   : > { %p13_p0 = scmp.ge.s32.totalorder %s16_s27, 6   ;;  %s2623_s22 = smov %s2143_s12 }
 0x406   : > { %s2624_s23 = smov %s2041_s25  ;;  %s2625_s24 = smov %s2045_s26 }
 0x407   : > { %s2626_s25 = smov %s2629_s28  ;;  %s2627_s26 = smov %s2633_s29 }
 0x408   :  { %15 = sbr.rel (!%p13_p0) target bundleno = 4 (0x4), region = 164 }

// kernel: attn_block_forward.2
= control target key start
LH: loop header
LB: loop body
LE: loop exit
PB: predicated region body
PF: predicated region fallthrough
CT: control target
= control target key end

     0   :  { %s1973_s27 = smov 0   ;;  %s2742_s0 = inlined_call_operand.vmem [shape: f32[2,64,256], index: 0, kind: input, shape index: {}]   ;;  %s2743_s1 = inlined_call_operand.vmem [shape: f32[64,64], index: 1, kind: input, shape index: {}]   ;;  %s2744_s2 = inlined_call_operand.vmem [shape: f32[64,1], index: 2, kind: input, shape index: {}]   ;;  %s2745_s3 = inlined_call_operand.vmem [shape: f32[64,1], index: 3, kind: input, shape index: {}]   ;;  %s2746_s4 = inlined_call_operand.vmem [shape: bf16[64,192], index: 4, kind: input, shape index: {}]   ;;  %s2747_s5 = inlined_call_operand.vmem [shape: f32[1,192], index: 5, kind: input, shape index: {}]   ;;  %s2748_s6 = inlined_call_operand.vmem [shape: bf16[2,256,64], index: 6, kind: output, shape index: {0}]   ;;  %s2749_s7 = inlined_call_operand.vmem [shape: bf16[2,256,64], index: 7, kind: output, shape index: {1}]   ;;  %s2750_s8 = inlined_call_operand.vmem [shape: bf16[2,256,64], index: 8, kind: output, shape index: {2}]  }
   0x1 LB: > { %s1664_s28 = sadd.s32 4294967295, %s1921_s27   ;;  %p1668_p0 = scmp.ge.s32.totalorder %s1921_s27, 1  ;;  %s1921_s27 = sphi %s1973_s27, %s19_s27  }
   0x2   : > { %p267_p1 = scmp.lt.s32.totalorder %s1921_s27, 3 }
   0x4   : > { %p268_p2 = pnand %p1668_p0, %p267_p1 }
   0x5   : > { %p311_p3 = scmp.lt.s32.totalorder (!%p268_p2), %s1664_s28, 1  ;;  %s1927_s20 = smov (!%p268_p2), 64  }
   0x6   : > { %271 = sbr.rel (%p268_p2) target bundleno = 1135 (0x46f), region = 44 }
   0xb   : > { %s2752_s28 = smov (!%p311_p3, %s1664_s28), 1  ;;  %vm412_vm0 = vcmask 7168   ;;  %vm429_vm1 = vcmask 523264  }
   0xc   : > { %s1981_s29 = sshll.u32 %s2752_s28, 7  ;;  %s1925_s28 = smov 1  }
   0xd   : > { %s1987_s10 = scalar_lea.vmem %s2742_s0, %s1981_s29  ;;  %s2427_s19 = scalar_lea.vmem %s2750_s8, %s1981_s29 }
   0xe   : > { %v1990_v0 = vld [vmem:[%s1987_s10 + $0x70] sm:$0xff]  ;;  %v1993_v1 = vld [vmem:[%s1987_s10 + $0x78] sm:$0xff]  ;;  %v1996_v2 = vld [vmem:[%s1987_s10 + $0x60] sm:$0xff]  ;;  %s2576_s23 = scalar_lea.vmem %s2749_s7, %s1981_s29 }
   0xf   : > { %v369_v3 = vadd.f32 %v1993_v1, %v1990_v0  ;;  %v2001_v4 = vld [vmem:[%s1987_s10 + $0x68] sm:$0xff]  ;;  %v2004_v5 = vld [vmem:[%s1987_s10 + $0x50] sm:$0xff]  ;;  %v2007_v6 = vld [vmem:[%s1987_s10 + $0x58] sm:$0xff]  ;;  %v386_v9 = vmul.f32 %v1990_v0, %v1990_v0  ;;  %v387_v10 = vmul.f32 %v1993_v1, %v1993_v1  ;;  %v384_v11 = vmul.f32 %v1996_v2, %v1996_v2 }
  0x10   : > { %v366_v7 = vadd.f32 %v2001_v4, %v1996_v2  ;;  %v363_v8 = vadd.f32 %v2007_v6, %v2004_v5  ;;  %v385_v12 = vmul.f32 %v2001_v4, %v2001_v4  ;;  %v382_v13 = vmul.f32 %v2004_v5, %v2004_v5  ;;  %v2026_v18 = vld [vmem:[%s1987_s10 + $0x40] sm:$0xff]  ;;  %v2029_v19 = vld [vmem:[%s1987_s10 + $0x48] sm:$0xff]  ;;  %v2036_v22 = vld [vmem:[%s1987_s10 + $0x30] sm:$0xff] }
  0x11   : > { %370 = vadd.xlane.f32.xlu0 %v369_v3  ;;  %v383_v14 = vmul.f32 %v2007_v6, %v2007_v6  ;;  %v409_v15 = vadd.f32 %v387_v10, %v386_v9  ;;  %v380_v20 = vmul.f32 %v2026_v18, %v2026_v18  ;;  %v381_v21 = vmul.f32 %v2029_v19, %v2029_v19  ;;  %v2039_v23 = vld [vmem:[%s1987_s10 + $0x38] sm:$0xff]  ;;  %v2050_v29 = vld [vmem:[%s1987_s10 + $0x20] sm:$0xff]  ;;  %v2053_v30 = vld [vmem:[%s1987_s10 + $0x28] sm:$0xff] }
  0x12   : > { %367 = vadd.xlane.f32.xlu1 %v366_v7  ;;  %364 = vadd.xlane.f32.xlu2 %v363_v8  ;;  %v406_v16 = vadd.f32 %v385_v12, %v384_v11  ;;  %v360_v24 = vadd.f32 %v2029_v19, %v2026_v18  ;;  %v357_v26 = vadd.f32 %v2039_v23, %v2036_v22  ;;  %v2062_v36 = vld [vmem:[%s1987_s10 + $0x10] sm:$0xff]  ;;  %v2065_v37 = vld [vmem:[%s1987_s10 + $0x18] sm:$0xff]  ;;  %v2074_v41 = vld [vmem:[%s1987_s10] sm:$0xff] }
  0x13   : > { %v403_v17 = vadd.f32 %v383_v14, %v382_v13  ;;  %v400_v25 = vadd.f32 %v381_v21, %v380_v20  ;;  %v378_v27 = vmul.f32 %v2036_v22, %v2036_v22  ;;  %v379_v28 = vmul.f32 %v2039_v23, %v2039_v23  ;;  %v2077_v42 = vld [vmem:[%s1987_s10 + $0x8] sm:$0xff]  ;;  %v421_v13 = vld [vmem:[%s2743_s1] sm:$0xff]  ;;  %v427_v20 = vld [vmem:[%s2743_s1 + $0x30] sm:$0xff] }
  0x14   : > { %v376_v31 = vmul.f32 %v2050_v29, %v2050_v29  ;;  %v377_v32 = vmul.f32 %v2053_v30, %v2053_v30  ;;  %v354_v34 = vadd.f32 %v2053_v30, %v2050_v29  ;;  %v374_v38 = vmul.f32 %v2062_v36, %v2062_v36  ;;  %v425_v14 = vld [vmem:[%s2743_s1 + $0x20] sm:$0xff]  ;;  %v423_v21 = vld [vmem:[%s2743_s1 + $0x10] sm:$0xff] }
  0x15   : > { %v397_v33 = vadd.f32 %v379_v28, %v378_v27  ;;  %v375_v39 = vmul.f32 %v2065_v37, %v2065_v37  ;;  %v351_v40 = vadd.f32 %v2065_v37, %v2062_v36  ;;  %v348_v44 = vadd.f32 %v2077_v42, %v2074_v41 }
  0x16   : > { %v394_v35 = vadd.f32 %v377_v32, %v376_v31  ;;  %v372_v45 = vmul.f32 %v2074_v41, %v2074_v41  ;;  %v373_v46 = vmul.f32 %v2077_v42, %v2077_v42  ;;  %v1924_v27 = vmov 512.0  }
  0x17   : > { %v391_v43 = vadd.f32 %v375_v39, %v374_v38  ;;  %1897 = vrcp.f32 %v1924_v27 }
  0x18   : > { %v388_v47 = vadd.f32 %v373_v46, %v372_v45 }
  0x19   : > { %410 = vadd.xlane.f32.xlu0 %v409_v15 }
  0x1a   : > { %407 = vadd.xlane.f32.xlu1 %v406_v16  ;;  %404 = vadd.xlane.f32.xlu2 %v403_v17  ;;  %v422_v16 = vld [vmem:[%s2743_s1 + $0x8] sm:$0xff] }
  0x1b   : > { %v426_v17 = vld [vmem:[%s2743_s1 + $0x28] sm:$0xff] }
  0x1d   : > { %v1898_v28 = vpop.eup %1897 }
  0x1e   : > { %v496_v31 = vmul.f32 512.0, %v1898_v28  ;;  %vm500_vm2 = vweird.f32 %v1898_v28 }
  0x20   : > { %v497_v32 = vsub.f32 1.0, %v496_v31 }
  0x21   : > { %361 = vadd.xlane.f32.xlu0 %v360_v24  ;;  %v424_v24 = vld [vmem:[%s2743_s1 + $0x18] sm:$0xff] }
  0x22   : > { %401 = vadd.xlane.f32.xlu1 %v400_v25  ;;  %358 = vadd.xlane.f32.xlu2 %v357_v26  ;;  %v428_v25 = vld [vmem:[%s2743_s1 + $0x38] sm:$0xff]  ;;  %v1923_v26 = vmov 0  }
  0x23   : > { %1793 = vset.pattern.permute.xlu0 %v1923_v26  ;;  %1794 = vset.pattern.permute.xlu2 %v1923_v26 }
  0x24   : > { %1795 = vset.pattern.permute.xlu1 %v1923_v26 }
  0x29   : > { %398 = vadd.xlane.f32.xlu0 %v397_v33  ;;  %v498_v33 = vmul.f32 %v1898_v28, %v497_v32 }
  0x2a   : > { %355 = vadd.xlane.f32.xlu1 %v354_v34  ;;  %395 = vadd.xlane.f32.xlu2 %v394_v35 }
  0x2b   : > { %v499_v34 = vadd.f32 %v1898_v28, %v498_v33 }
  0x2d   : > { %v501_v35 = vsel %vm500_vm2, %v1898_v28, %v499_v34 }
  0x31   : > { %352 = vadd.xlane.f32.xlu0 %v351_v40 }
  0x32   : > { %392 = vadd.xlane.f32.xlu1 %v391_v43  ;;  %349 = vadd.xlane.f32.xlu2 %v348_v44 }
  0x39   : > { %389 = vadd.xlane.f32.xlu0 %v388_v47 }
  0x84   : > { %v371_v48 = vpop.xlane.xlu0 %370 }
  0x85   : > { %v368_v49 = vpop.xlane.xlu1 %367  ;;  %v365_v50 = vpop.xlane.xlu2 %364 }
  0x8c   : > { %v411_v51 = vpop.xlane.xlu0 %410 }
  0x8d   : > { %v408_v52 = vpop.xlane.xlu1 %407  ;;  %v405_v53 = vpop.xlane.xlu2 %404  ;;  %v420_v54 = vsel %vm412_vm0, %v371_v48, %v411_v51 }
  0x8e   : > { %462 = vmatpush.msra.mxu0 %v420_v54  ;;  %1763 = vmatpush.msra.mxu3 %v420_v54  ;;  %v419_v55 = vsel %vm412_vm0, %v368_v49, %v408_v52  ;;  %v418_v56 = vsel %vm412_vm0, %v365_v50, %v405_v53 }
  0x90   : > { %463 = vmatpush.msra.mxu0 %v419_v55  ;;  %1764 = vmatpush.msra.mxu3 %v419_v55 }
  0x92   : > { %464 = vmatpush.msra.mxu0 %v418_v56  ;;  %1765 = vmatpush.msra.mxu3 %v418_v56 }
  0x94   : > { %v362_v57 = vpop.xlane.xlu0 %361 }
  0x95   : > { %v402_v58 = vpop.xlane.xlu1 %401  ;;  %v359_v59 = vpop.xlane.xlu2 %358 }
  0x96   : > { %v417_v60 = vsel %vm412_vm0, %v362_v57, %v402_v58  ;;  %v830_v58 = vld [vmem:[%s2745_s3] sm:$0xff] }
  0x97   : > { %465 = vmatpush.msra.mxu0 %v417_v60  ;;  %1766 = vmatpush.msra.mxu3 %v417_v60 }
  0x9c   : > { %v399_v61 = vpop.xlane.xlu0 %398 }
  0x9d   : > { %v356_v62 = vpop.xlane.xlu1 %355  ;;  %v416_v63 = vsel %vm412_vm0, %v359_v59, %v399_v61  ;;  %v396_v3 = vpop.xlane.xlu2 %395  ;;  %v766_v61 = vld [vmem:[%s2744_s2] sm:$0xff] }
  0x9e   : > { %466 = vmatpush.msra.mxu0 %v416_v63  ;;  %1767 = vmatpush.msra.mxu3 %v416_v63  ;;  %v415_v7 = vsel %vm412_vm0, %v356_v62, %v396_v3  ;;  %v831_v62 = vld [vmem:[%s2745_s3 + $0x8] sm:$0xff] }
  0x9f   : > { %v767_v3 = vld [vmem:[%s2744_s2 + $0x8] sm:$0xff] }
  0xa0   : > { %467 = vmatpush.msra.mxu0 %v415_v7  ;;  %1768 = vmatpush.msra.mxu3 %v415_v7  ;;  %v768_v7 = vld [vmem:[%s2744_s2 + $0x10] sm:$0xff] }
  0xa4   : > { %v353_v8 = vpop.xlane.xlu0 %352 }
  0xa5   : > { %v393_v9 = vpop.xlane.xlu1 %392  ;;  %v350_v11 = vpop.xlane.xlu2 %349 }
  0xa6   : > { %v414_v10 = vsel %vm412_vm0, %v353_v8, %v393_v9  ;;  %v769_v8 = vld [vmem:[%s2744_s2 + $0x18] sm:$0xff]  ;;  %v770_v9 = vld [vmem:[%s2744_s2 + $0x20] sm:$0xff] }
  0xa7   : > { %468 = vmatpush.msra.mxu0 %v414_v10  ;;  %1769 = vmatpush.msra.mxu3 %v414_v10  ;;  %v832_v10 = vld [vmem:[%s2745_s3 + $0x10] sm:$0xff] }
  0xac   : > { %v390_v12 = vpop.xlane.xlu0 %389 }
  0xad   : > { %v413_v15 = vsel %vm412_vm0, %v350_v11, %v390_v12  ;;  %v833_v11 = vld [vmem:[%s2745_s3 + $0x18] sm:$0xff]  ;;  %v834_v12 = vld [vmem:[%s2745_s3 + $0x20] sm:$0xff] }
  0xae   : > { %469 = vmatpush.msra.mxu0 %v413_v15  ;;  %1770 = vmatpush.msra.mxu3 %v413_v15 }
  0xaf   : > { %1677 = vmatmul.msk.f32.vlgmr.msra.gmra.mxu0 %vm429_vm1, %v421_v13  ;;  %1681 = vmatmul.msk.f32.vlgmr.msra.gmra.mxu3 %vm429_vm1, %v425_v14  ;;  %v772_v13 = vld [vmem:[%s2744_s2 + $0x30] sm:$0xff] }
  0xb7   : > { %1678 = vmatmul.msk.f32.gmra.mxu0 %vm429_vm1, %v422_v16  ;;  %1682 = vmatmul.msk.f32.gmra.mxu3 %vm429_vm1, %v426_v17  ;;  %v771_v16 = vld [vmem:[%s2744_s2 + $0x28] sm:$0xff]  ;;  %v836_v17 = vld [vmem:[%s2745_s3 + $0x30] sm:$0xff] }
  0xbf   : > { %1683 = vmatmul.msk.f32.gmra.mxu3 %vm429_vm1, %v427_v20  ;;  %1679 = vmatmul.msk.f32.gmra.mxu0 %vm429_vm1, %v423_v21  ;;  %v835_v20 = vld [vmem:[%s2745_s3 + $0x28] sm:$0xff] }
  0xc7   : > { %1680 = vmatmul.msk.f32.gmra.mxu0 %vm429_vm1, %v424_v24  ;;  %1684 = vmatmul.msk.f32.gmra.mxu3 %vm429_vm1, %v428_v25  ;;  %v1926_v25 = vmov 1  }
 0x12c   : > { %v471_v38 = vpop.f32.mrf.mxu0 }
 0x12d   : > { %v2128_v39 = vmul.f32 %v501_v35, %v471_v38 }
 0x12f   : > { %656 = vperm.xlu0 %1793, %v2128_v39   ;;  %v510_v40 = vmul.f32 %v2128_v39, %v2128_v39 }
 0x131   : > { %526 = vrot.lane.b32.xlu1 %v510_v40, %s1925_s28 }
 0x132   : > { %v483_v43 = vpop.f32.mrf.mxu3 }
 0x133   : > { %v2134_v44 = vmul.f32 %v501_v35, %v483_v43 }
 0x134   : > { %v474_v45 = vpop.f32.mrf.mxu0 }
 0x135   : > { %v2136_v46 = vmul.f32 %v501_v35, %v474_v45  ;;  %v514_v47 = vmul.f32 %v2134_v44, %v2134_v44 }
 0x137   : > { %661 = vperm.xlu2 %1794, %v2136_v46   ;;  %v511_v53 = vmul.f32 %v2136_v46, %v2136_v46 }
 0x139   : > { %534 = vrot.lane.b32.xlu1 %v514_v47, %s1925_s28 }
 0x13a   : > { %v486_v48 = vpop.f32.mrf.mxu3 }
 0x13b   : > { %v2142_v49 = vmul.f32 %v501_v35, %v486_v48 }
 0x13c   : > { %v477_v50 = vpop.f32.mrf.mxu0 }
 0x13d   : > { %v2144_v51 = vmul.f32 %v501_v35, %v477_v50  ;;  %v515_v52 = vmul.f32 %v2142_v49, %v2142_v49 }
 0x13f   : > { %536 = vrot.lane.b32.xlu0 %v515_v52, %s1925_s28  ;;  %528 = vrot.lane.b32.xlu2 %v511_v53, %s1925_s28  ;;  %v512_v57 = vmul.f32 %v2144_v51, %v2144_v51 }
 0x141   : > { %666 = vperm.xlu1 %1795, %v2144_v51  }
 0x142   : > { %v489_v54 = vpop.f32.mrf.mxu3 }
 0x143   : > { %v508_v55 = vmul.f32 %v501_v35, %v489_v54 }
 0x144   : > { %v480_v59 = vpop.f32.mrf.mxu0 }
 0x145   : > { %v516_v56 = vmul.f32 %v508_v55, %v508_v55  ;;  %v2160_v60 = vmul.f32 %v501_v35, %v480_v59 }
 0x147   : > { %538 = vrot.lane.b32.xlu2 %v516_v56, %s1925_s28  ;;  %530 = vrot.lane.b32.xlu0 %v512_v57, %s1925_s28  ;;  %v513_v63 = vmul.f32 %v2160_v60, %v2160_v60 }
 0x149   : > { %840 = vperm.xlu1 %1795, %v830_v58  }
 0x14a   : > { %v492_v14 = vpop.f32.mrf.mxu3 }
 0x14b   : > { %v2198_v15 = vmul.f32 %v501_v35, %v492_v14 }
 0x14d   : > { %v517_v21 = vmul.f32 %v2198_v15, %v2198_v15 }
 0x14f   : > { %776 = vperm.xlu0 %1793, %v766_v61   ;;  %671 = vperm.xlu2 %1794, %v2160_v60  }
 0x151   : > { %845 = vperm.xlu1 %1795, %v831_v62  }
 0x157   : > { %781 = vperm.xlu0 %1793, %v767_v3   ;;  %532 = vrot.lane.b32.xlu2 %v513_v63, %s1925_s28 }
 0x159   : > { %676 = vperm.xlu1 %1795, %v2134_v44  }
 0x15f   : > { %786 = vperm.xlu0 %1793, %v768_v7   ;;  %791 = vperm.xlu2 %1794, %v769_v8  }
 0x161   : > { %796 = vperm.xlu1 %1795, %v770_v9  }
 0x167   : > { %850 = vperm.xlu0 %1793, %v832_v10   ;;  %855 = vperm.xlu2 %1794, %v833_v11  }
 0x169   : > { %860 = vperm.xlu1 %1795, %v834_v12  }
 0x16f   : > { %681 = vperm.xlu0 %1793, %v2142_v49   ;;  %686 = vperm.xlu2 %1794, %v508_v55  }
 0x171   : > { %806 = vperm.xlu1 %1795, %v772_v13  }
 0x177   : > { %691 = vperm.xlu0 %1793, %v2198_v15   ;;  %801 = vperm.xlu2 %1794, %v771_v16  }
 0x179   : > { %870 = vperm.xlu1 %1795, %v836_v17  }
 0x17f   : > { %865 = vperm.xlu2 %1794, %v835_v20   ;;  %1798 = vset.pattern.permute.xlu0 %v1926_v25 }
 0x181   : > { %540 = vrot.lane.b32.xlu1 %v517_v21, %s1925_s28  ;;  %s2421_s28 = scalar_lea.vmem %s2748_s6, %s1981_s29 }
 0x182   : > { %1796 = vset.pattern.permute.xlu1 %v1926_v25 }
 0x187   : > { %1797 = vset.pattern.permute.xlu2 %v1926_v25 }
 0x191   : > { %v2213_v24 = vpop.permute.xlu2 %661 }
 0x199   : > { %v529_v27 = vpop.permute.xlu2 %528 }
 0x19a   : > { %v551_v28 = vsub.f32 %v2136_v46, %v529_v27 }
 0x19c   : > { %v559_v31 = vmax.f32 %v551_v28, 0.0 }
 0x19e   : > { %v567_v32 = vadd.f32 1e-06, %v559_v31 }
 0x1a0   : > { %1899 = vrsqrt.f32 %v567_v32  ;;  %vm590_vm4 = vweird.f32 %v567_v32 }
 0x1a1   : > { %v539_v33 = vpop.permute.xlu2 %538  ;;  %v2217_v52 = vpop.permute.xlu0 %656 }
 0x1a2   : > { %v556_v34 = vsub.f32 %v508_v55, %v539_v33 }
 0x1a3   : > { %v527_v35 = vpop.permute.xlu1 %526 }
 0x1a4   : > { %v550_v38 = vsub.f32 %v2128_v39, %v527_v35  ;;  %v564_v43 = vmax.f32 %v556_v34, 0.0 }
 0x1a6   : > { %v1900_v40 = vpop.eup %1899  ;;  %v558_v45 = vmax.f32 %v550_v38, 0.0  ;;  %v2221_v54 = vadd.f32 1e-06, %v564_v43 }
 0x1a7   : > { %v585_v47 = vmul.f32 %v1900_v40, %v567_v32  ;;  %vm591_vm3 = vweird.f32 %v1900_v40 }
 0x1a8   : > { %v566_v48 = vadd.f32 1e-06, %v558_v45  ;;  %vm592_vm5 = vmor %vm590_vm4, %vm591_vm3  ;;  %vm640_vm0 = vweird.f32 %v2221_v54 }
 0x1a9   : > { %v586_v50 = vmul.f32 %v1900_v40, %v585_v47  ;;  %v2219_v53 = vpop.permute.xlu2 %671 }
 0x1aa   : > { %1901 = vrsqrt.f32 %v566_v48  ;;  %vm580_vm7 = vweird.f32 %v566_v48 }
 0x1ab   : > { %v587_v46 = vmul.f32 0.5, %v586_v50  ;;  %v535_v56 = vpop.permute.xlu1 %534  ;;  %1903 = vrsqrt.f32 %v2221_v54 }
 0x1ac   : > { %v554_v55 = vsub.f32 %v2134_v44, %v535_v56 }
 0x1ad   : > { %v588_v57 = vsub.f32 1.5, %v587_v46 }
 0x1ae   : > { %v562_v39 = vmax.f32 %v554_v55, 0.0 }
 0x1af   : > { %v589_v58 = vmul.f32 %v1900_v40, %v588_v57 }
 0x1b0   : > { %v1902_v59 = vpop.eup %1901  ;;  %v570_v61 = vadd.f32 1e-06, %v562_v39 }
 0x1b1   : > { %v575_v62 = vmul.f32 %v1902_v59, %v566_v48  ;;  %v537_v63 = vpop.permute.xlu0 %536  ;;  %v533_v3 = vpop.permute.xlu2 %532  ;;  %v593_v7 = vsel %vm592_vm5, %v1900_v40, %v589_v58  ;;  %vm581_vm6 = vweird.f32 %v1902_v59 }
 0x1b2   : > { %1905 = vrsqrt.f32 %v570_v61  ;;  %v555_v8 = vsub.f32 %v2142_v49, %v537_v63  ;;  %v553_v9 = vsub.f32 %v2160_v60, %v533_v3  ;;  %717 = vperm.xlu2 %1797, %v593_v7   ;;  %v1904_v11 = vpop.eup %1903  ;;  %vm582_vm8 = vmor %vm580_vm7, %vm581_vm6  ;;  %vm620_vm10 = vweird.f32 %v570_v61 }
 0x1b3   : > { %v576_v44 = vmul.f32 %v1902_v59, %v575_v62  ;;  %v2227_v10 = vpop.permute.xlu1 %666  ;;  %v635_v17 = vmul.f32 %v1904_v11, %v2221_v54  ;;  %vm641_vm13 = vweird.f32 %v1904_v11 }
 0x1b4   : > { %v563_v12 = vmax.f32 %v555_v8, 0.0  ;;  %v561_v13 = vmax.f32 %v553_v9, 0.0  ;;  %vm642_vm2 = vmor %vm640_vm0, %vm641_vm13 }
 0x1b5   : > { %v577_v14 = vmul.f32 0.5, %v576_v44  ;;  %v636_v31 = vmul.f32 %v1904_v11, %v635_v17 }
 0x1b6   : > { %v571_v16 = vadd.f32 1e-06, %v563_v12  ;;  %v2230_v25 = vadd.f32 1e-06, %v561_v13 }
 0x1b7   : > { %v578_v20 = vsub.f32 1.5, %v577_v14  ;;  %v637_v45 = vmul.f32 0.5, %v636_v31 }
 0x1b8   : > { %v1906_v21 = vpop.eup %1905  ;;  %1907 = vrsqrt.f32 %v571_v16  ;;  %vm630_vm14 = vweird.f32 %v571_v16  ;;  %vm610_vm7 = vweird.f32 %v2230_v25 }
 0x1b9   : > { %v615_v49 = vmul.f32 %v1906_v21, %v570_v61  ;;  %v531_v27 = vpop.permute.xlu0 %530  ;;  %v579_v60 = vmul.f32 %v1902_v59, %v578_v20  ;;  %1909 = vrsqrt.f32 %v2230_v25  ;;  %vm621_vm9 = vweird.f32 %v1906_v21 }
 0x1ba   : > { %v552_v28 = vsub.f32 %v2144_v51, %v531_v27  ;;  %vm622_vm11 = vmor %vm620_vm10, %vm621_vm9  ;;  %v638_v39 = vsub.f32 1.5, %v637_v45 }
 0x1bb   : > { %v616_v32 = vmul.f32 %v1906_v21, %v615_v49  ;;  %v2233_v33 = vpop.permute.xlu1 %840  ;;  %v583_v34 = vsel %vm582_vm8, %v1902_v59, %v579_v60 }
 0x1bc   : > { %v560_v35 = vmax.f32 %v552_v28, 0.0  ;;  %712 = vperm.xlu1 %1796, %v583_v34   ;;  %v639_v7 = vmul.f32 %v1904_v11, %v638_v39 }
 0x1bd   : > { %v617_v38 = vmul.f32 0.5, %v616_v32 }
 0x1be   : > { %v1908_v40 = vpop.eup %1907  ;;  %v568_v43 = vadd.f32 1e-06, %v560_v35  ;;  %v643_v13 = vsel %vm642_vm2, %v1904_v11, %v639_v7  ;;  %v773_v11 = vld [vmem:[%s2744_s2 + $0x38] sm:$0xff]  ;;  %v695_v7 = vsub.f32 %v2077_v42, %v2217_v52 }
 0x1bf   : > { %v625_v47 = vmul.f32 %v1908_v40, %v571_v16  ;;  %v618_v50 = vsub.f32 1.5, %v617_v38  ;;  %v1910_v46 = vpop.eup %1909  ;;  %vm631_vm12 = vweird.f32 %v1908_v40 }
 0x1c0   : > { %1911 = vrsqrt.f32 %v568_v43  ;;  %v605_v58 = vmul.f32 %v1910_v46, %v2230_v25  ;;  %vm632_vm15 = vmor %vm630_vm14, %vm631_vm12  ;;  %vm600_vm4 = vweird.f32 %v568_v43  ;;  %vm611_vm6 = vweird.f32 %v1910_v46 }
 0x1c1   : > { %v626_v48 = vmul.f32 %v1908_v40, %v625_v47  ;;  %v619_v51 = vmul.f32 %v1906_v21, %v618_v50  ;;  %vm612_vm8 = vmor %vm610_vm7, %vm611_vm6  ;;  %vm1286_vm12 = vcmask 519168  }
 0x1c2   : > { %v606_v61 = vmul.f32 %v1910_v46, %v605_v58 }
 0x1c3   : > { %v627_v56 = vmul.f32 0.5, %v626_v48  ;;  %v2236_v55 = vpop.permute.xlu1 %845  ;;  %v623_v57 = vsel %vm622_vm11, %v1906_v21, %v619_v51 }
 0x1c4   : > { %732 = vperm.xlu1 %1796, %v623_v57   ;;  %v607_v14 = vmul.f32 0.5, %v606_v61  ;;  %v777_v57 = vpop.permute.xlu0 %776 }
 0x1c5   : > { %v628_v59 = vsub.f32 1.5, %v627_v56 }
 0x1c6   : > { %v1912_v62 = vpop.eup %1911  ;;  %v608_v21 = vsub.f32 1.5, %v607_v14 }
 0x1c7   : > { %v595_v63 = vmul.f32 %v1912_v62, %v568_v43  ;;  %v629_v3 = vmul.f32 %v1908_v40, %v628_v59  ;;  %vm601_vm3 = vweird.f32 %v1912_v62 }
 0x1c8   : > { %vm602_vm5 = vmor %vm600_vm4, %vm601_vm3  ;;  %v609_v54 = vmul.f32 %v1910_v46, %v608_v21 }
 0x1c9   : > { %v596_v8 = vmul.f32 %v1912_v62, %v595_v63  ;;  %v633_v9 = vsel %vm632_vm15, %v1908_v40, %v629_v3  ;;  %v792_v40 = vpop.permute.xlu2 %791  ;;  %v694_v3 = vsub.f32 %v2074_v41, %v2217_v52 }
 0x1ca   : > { %737 = vperm.xlu0 %1798, %v633_v9   ;;  %v613_v27 = vsel %vm612_vm8, %v1910_v46, %v609_v54 }
 0x1cb   : > { %v597_v44 = vmul.f32 0.5, %v596_v8  ;;  %v2240_v12 = vpop.permute.xlu1 %676  ;;  %v696_v8 = vsub.f32 %v2062_v36, %v2213_v24  ;;  %v698_v36 = vsub.f32 %v2050_v29, %v2227_v10  ;;  %v701_v29 = vsub.f32 %v2039_v23, %v2219_v53 }
 0x1cc   : > { %742 = vperm.xlu1 %1796, %v643_v13   ;;  %v782_v58 = vpop.permute.xlu0 %781 }
 0x1cd   : > { %v598_v17 = vsub.f32 1.5, %v597_v44 }
 0x1cf   : > { %v599_v20 = vmul.f32 %v1912_v62, %v598_v17 }
 0x1d1   : > { %v603_v16 = vsel %vm602_vm5, %v1912_v62, %v599_v20  ;;  %v2256_v50 = vpop.permute.xlu2 %855 }
 0x1d2   : > { %722 = vperm.xlu2 %1797, %v603_v16   ;;  %1799 = vset.pattern.permute.xlu0 %v1923_v26 }
 0x1d3   : > { %v2243_v49 = vpop.permute.xlu1 %796  ;;  %811 = vperm.xlu0 %1799, %v773_v11  }
 0x1d4   : > { %v787_v62 = vpop.permute.xlu0 %786 }
 0x1d9   : > { %v2258_v56 = vpop.permute.xlu2 %686 }
 0x1da   : > { %727 = vperm.xlu2 %1797, %v613_v27  }
 0x1db   : > { %v2249_v60 = vpop.permute.xlu1 %860 }
 0x1dc   : > { %v851_v16 = vpop.permute.xlu0 %850 }
 0x1e1   : > { %v2264_v39 = vpop.permute.xlu2 %801 }
 0x1e3   : > { %v2251_v28 = vpop.permute.xlu1 %806 }
 0x1e9   : > { %v2266_v59 = vpop.permute.xlu2 %865 }
 0x1eb   : > { %v2253_v31 = vpop.permute.xlu1 %870 }
 0x1f3   : > { %v541_v32 = vpop.permute.xlu1 %540 }
 0x1f4   : > { %v557_v34 = vsub.f32 %v2198_v15, %v541_v32  ;;  %v837_v15 = vld [vmem:[%s2745_s3 + $0x38] sm:$0xff] }
 0x1f6   : > { %v565_v35 = vmax.f32 %v557_v34, 0.0 }
 0x1f8   : > { %v573_v38 = vadd.f32 1e-06, %v565_v35  ;;  %v682_v35 = vpop.permute.xlu0 %681 }
 0x1fa   : > { %1913 = vrsqrt.f32 %v573_v38  ;;  %vm650_vm10 = vweird.f32 %v573_v38 }
 0x200   : > { %v1914_v43 = vpop.eup %1913 }
 0x201   : > { %v645_v45 = vmul.f32 %v1914_v43, %v573_v38  ;;  %vm651_vm9 = vweird.f32 %v1914_v43 }
 0x202   : > { %vm652_vm11 = vmor %vm650_vm10, %vm651_vm9 }
 0x203   : > { %v646_v25 = vmul.f32 %v1914_v43, %v645_v45 }
 0x205   : > { %v647_v47 = vmul.f32 0.5, %v646_v25  ;;  %v700_v25 = vsub.f32 %v2036_v22, %v2219_v53 }
 0x207   : > { %v648_v48 = vsub.f32 1.5, %v647_v47 }
 0x209   : > { %v649_v51 = vmul.f32 %v1914_v43, %v648_v48 }
 0x20b   : > { %v653_v46 = vsel %vm652_vm11, %v1914_v43, %v649_v51 }
 0x20c   : > { %747 = vperm.xlu2 %1797, %v653_v46   ;;  %v718_v63 = vpop.permute.xlu2 %717 }
 0x20d   : > { %v752_v13 = vmul.f32 %v718_v63, %v696_v8  ;;  %v704_v8 = vsub.f32 %v2004_v5, %v682_v35  ;;  %v1761_v5 = vld [vmem:[%s2746_s4 + $0x34] sm:$0xf] }
 0x20f   : > { %v816_v42 = vmul.f32 %v782_v58, %v752_v13 }
 0x214   : > { %1800 = vset.pattern.permute.xlu2 %v1923_v26  ;;  %v697_v26 = vsub.f32 %v2065_v37, %v2213_v24  ;;  %v699_v37 = vsub.f32 %v2053_v30, %v2227_v10  ;;  %v880_v24 = vadd.f32 %v2236_v55, %v816_v42 }
 0x215   : > { %875 = vperm.xlu2 %1800, %v837_v15   ;;  %v692_v15 = vpop.permute.xlu0 %691 }
 0x216   : > { %v753_v14 = vmul.f32 %v718_v63, %v697_v26 }
 0x218   : > { %v817_v52 = vmul.f32 %v782_v58, %v753_v14  ;;  %v702_v58 = vsub.f32 %v2026_v18, %v2240_v12  ;;  %v705_v18 = vsub.f32 %v2007_v6, %v682_v35  ;;  %v1713_v14 = vld [vmem:[%s2746_s4 + $0x38] sm:$0xf0] }
 0x21a   : > { %v881_v27 = vadd.f32 %v2236_v55, %v817_v52 }
 0x21c   : > { %v1803_v43 = vpack.i.bf16 %v881_v27, %v880_v24  ;;  %v708_v24 = vsub.f32 %v1990_v0, %v692_v15  ;;  %v1760_v0 = vld [vmem:[%s2746_s4 + $0x24] sm:$0xf0] }
 0x22c   : > { %v723_v54 = vpop.permute.xlu2 %722 }
 0x22d   : > { %v754_v32 = vmul.f32 %v723_v54, %v698_v36  ;;  %v755_v34 = vmul.f32 %v723_v54, %v699_v37 }
 0x22e   : > { %v713_v61 = vpop.permute.xlu1 %712 }
 0x22f   : > { %v750_v9 = vmul.f32 %v713_v61, %v694_v3  ;;  %v751_v44 = vmul.f32 %v713_v61, %v695_v7  ;;  %v818_v38 = vmul.f32 %v787_v62, %v754_v32 }
 0x231   : > { %v814_v17 = vmul.f32 %v777_v57, %v750_v9  ;;  %v815_v20 = vmul.f32 %v777_v57, %v751_v44  ;;  %v882_v30 = vadd.f32 %v851_v16, %v818_v38 }
 0x233   : > { %v878_v21 = vadd.f32 %v2233_v33, %v814_v17  ;;  %v879_v41 = vadd.f32 %v2233_v33, %v815_v20  ;;  %v819_v33 = vmul.f32 %v787_v62, %v755_v34  ;;  %v703_v62 = vsub.f32 %v2029_v19, %v2240_v12 }
 0x234   : > { %v728_v45 = vpop.permute.xlu2 %727  ;;  %v1716_v20 = vor.u32 %v1761_v5, %v1713_v14 }
 0x235   : > { %v1801_v11 = vpack.i.bf16 %v879_v41, %v878_v21  ;;  %v883_v10 = vadd.f32 %v851_v16, %v819_v33  ;;  %v756_v47 = vmul.f32 %v728_v45, %v700_v25  ;;  %v757_v48 = vmul.f32 %v728_v45, %v701_v29  ;;  %v1705_v29 = vld [vmem:[%s2746_s4 + $0x28] sm:$0xf0] }
 0x236   : > { %v733_v57 = vpop.permute.xlu1 %732  ;;  %v706_v16 = vsub.f32 %v1996_v2, %v2258_v56  ;;  %v707_v21 = vsub.f32 %v2001_v4, %v2258_v56  ;;  %1169 = vmatpush.bf16.msrb.mxu0 %v1716_v20  ;;  %1775 = vmatpush.bf16.msra.mxu2 %v1716_v20 }
 0x237   : > { %1802 = vxpose.xlu1.b32.start [1/8] (short) %v1801_v11, 128  ;;  %v820_v51 = vmul.f32 %v792_v40, %v756_v47  ;;  %v821_v55 = vmul.f32 %v792_v40, %v757_v48  ;;  %v1805_v46 = vpack.i.bf16 %v883_v10, %v882_v30  ;;  %v758_v53 = vmul.f32 %v733_v57, %v702_v58  ;;  %v1695_v30 = vld [vmem:[%s2746_s4 + $0x10] sm:$0xf]  ;;  %v1758_v10 = vld [vmem:[%s2746_s4 + $0x14] sm:$0xf0]  ;;  %v1757_v48 = vld [vmem:[%s2746_s4 + $0x14] sm:$0xf] }
 0x238   : > { %v759_v63 = vmul.f32 %v733_v57, %v703_v62  ;;  %v1756_v57 = vld [vmem:[%s2746_s4 + $0x4] sm:$0xf0]  ;;  %v1755_v58 = vld [vmem:[%s2746_s4 + $0x4] sm:$0xf] }
 0x239   : > { %v884_v22 = vadd.f32 %v2256_v50, %v820_v51  ;;  %v885_v23 = vadd.f32 %v2256_v50, %v821_v55  ;;  %v822_v3 = vmul.f32 %v2243_v49, %v758_v53  ;;  %v1711_v50 = vld [vmem:[%s2746_s4 + $0x30] sm:$0xf]  ;;  %v1697_v51 = vld [vmem:[%s2746_s4 + $0x18] sm:$0xf0]  ;;  %v1696_v55 = vor.u32 %v1758_v10, %v1695_v30 }
 0x23a   : > { %v823_v40 = vmul.f32 %v2243_v49, %v759_v63  ;;  %v1762_v49 = vld [vmem:[%s2746_s4 + $0x34] sm:$0xf0] }
 0x23b   : > { %v1807_v7 = vpack.i.bf16 %v885_v23, %v884_v22  ;;  %v886_v19 = vadd.f32 %v2249_v60, %v822_v3  ;;  %v1689_v22 = vld [vmem:[%s2746_s4 + $0x8] sm:$0xf0] }
 0x23c   : > { %v738_v61 = vpop.permute.xlu0 %737  ;;  %v887_v12 = vadd.f32 %v2249_v60, %v823_v40  ;;  %v1712_v60 = vor.u32 %v1762_v49, %v1711_v50  ;;  %v1692_v23 = vor.u32 %v1755_v58, %v1689_v22 }
 0x23d   : > { %v760_v26 = vmul.f32 %v738_v61, %v704_v8  ;;  %v761_v9 = vmul.f32 %v738_v61, %v705_v18 }
 0x23e   : > { %v1809_v13 = vpack.i.bf16 %v887_v12, %v886_v19  ;;  %v743_v17 = vpop.permute.xlu1 %742  ;;  %1080 = vmatpush.bf16.msra.mxu1 %v1712_v60  ;;  %1771 = vmatpush.bf16.msrb.mxu3 %v1712_v60 }
 0x23f   : > { %1804 = vxpose.xlu1.b32.cont [2/8] (short) %v1803_v43, 128  ;;  %v824_v6 = vmul.f32 %v2264_v39, %v760_v26  ;;  %v825_v44 = vmul.f32 %v2264_v39, %v761_v9  ;;  %v762_v54 = vmul.f32 %v743_v17, %v706_v16  ;;  %v763_v42 = vmul.f32 %v743_v17, %v707_v21 }
 0x241   : > { %v888_v39 = vadd.f32 %v2266_v59, %v824_v6  ;;  %v889_v41 = vadd.f32 %v2266_v59, %v825_v44  ;;  %v826_v52 = vmul.f32 %v2251_v28, %v762_v54  ;;  %v827_v11 = vmul.f32 %v2251_v28, %v763_v42 }
 0x242   : > { %v709_v59 = vsub.f32 %v1993_v1, %v692_v15  ;;  %v1759_v1 = vld [vmem:[%s2746_s4 + $0x24] sm:$0xf]  ;;  %v1687_v15 = vld [vmem:[%s2746_s4] sm:$0xf] }
 0x243   : > { %v1811_v36 = vpack.i.bf16 %v889_v41, %v888_v39  ;;  %v890_v2 = vadd.f32 %v2253_v31, %v826_v52  ;;  %v891_v4 = vadd.f32 %v2253_v31, %v827_v11  ;;  %v1703_v31 = vld [vmem:[%s2746_s4 + $0x20] sm:$0xf]  ;;  %v1708_v47 = vor.u32 %v1759_v1, %v1705_v29 }
 0x244   : > { %v1704_v25 = vor.u32 %v1760_v0, %v1703_v31  ;;  %v1688_v62 = vor.u32 %v1756_v57, %v1687_v15 }
 0x245   : > { %v1813_v56 = vpack.i.bf16 %v891_v4, %v890_v2  ;;  %v812_v34 = vpop.permute.xlu0 %811  ;;  %1170 = vmatpush.bf16.msrb.mxu0 %v1708_v47  ;;  %1776 = vmatpush.bf16.msra.mxu2 %v1708_v47 }
 0x246   : > { %1081 = vmatpush.bf16.msra.mxu1 %v1704_v25  ;;  %1772 = vmatpush.bf16.msrb.mxu3 %v1704_v25 }
 0x247   : > { %1806 = vxpose.xlu1.b32.cont [3/8] (short) %v1805_v46, 128  ;;  %v1700_v46 = vor.u32 %v1757_v48, %v1697_v51 }
 0x249   : > { %1171 = vmatpush.bf16.msrb.mxu0 %v1700_v46  ;;  %1777 = vmatpush.bf16.msra.mxu2 %v1700_v46 }
 0x24a   : > { %1082 = vmatpush.bf16.msra.mxu1 %v1696_v55  ;;  %1773 = vmatpush.bf16.msrb.mxu3 %v1696_v55 }
 0x24d   : > { %1172 = vmatpush.bf16.msrb.mxu0 %v1692_v23  ;;  %1778 = vmatpush.bf16.msra.mxu2 %v1692_v23 }
 0x24e   : > { %1083 = vmatpush.bf16.msra.mxu1 %v1688_v62  ;;  %1774 = vmatpush.bf16.msrb.mxu3 %v1688_v62 }
 0x24f   : > { %1808 = vxpose.xlu1.b32.cont [4/8] (short) %v1807_v7, 128 }
 0x257   : > { %1810 = vxpose.xlu1.b32.cont [5/8] (short) %v1809_v13, 128 }
 0x25f   : > { %1812 = vxpose.xlu1.b32.cont [6/8] (short) %v1811_v36, 128 }
 0x266   : > { %v748_v37 = vpop.permute.xlu2 %747 }
 0x267   : > { %1814 = vxpose.xlu1.b32.cont [7/8] (short) %v1813_v56, 128  ;;  %v764_v27 = vmul.f32 %v748_v37, %v708_v24  ;;  %v765_v32 = vmul.f32 %v748_v37, %v709_v59 }
 0x269   : > { %v828_v35 = vmul.f32 %v812_v34, %v764_v27  ;;  %v829_v38 = vmul.f32 %v812_v34, %v765_v32 }
 0x26f   : > { %v876_v33 = vpop.permute.xlu2 %875 }
 0x270   : > { %v892_v28 = vadd.f32 %v876_v33, %v828_v35  ;;  %v893_v43 = vadd.f32 %v876_v33, %v829_v38 }
 0x272   : > { %v1815_v45 = vpack.i.bf16 %v893_v43, %v892_v28 }
 0x274   : > { %1816 = vxpose.xlu1.b32.end [8/8] (short) %v1815_v45, 128 }
 0x2e0   : > { %v1817_v53 = vpop.trf.xlu1 }
 0x2e1   : > { %v1821_v63 = vunpack.i.h.bf16 %v1817_v53  ;;  %v1818_v3 = vunpack.i.l.bf16 %v1817_v53  ;;  %v982_v53 = vld [vmem:[%s2747_s5] sm:$0x3] }
 0x2e8   : > { %v1822_v40 = vpop.trf.xlu1 }
 0x2e9   : > { %v1826_v7 = vunpack.i.h.bf16 %v1822_v40  ;;  %v1823_v61 = vunpack.i.l.bf16 %v1822_v40 }
 0x2eb   : > { %v958_v8 = vpack.c.bf16 %v1823_v61, %v1818_v3  ;;  %v2362_v18 = vpack.c.bf16 %v1826_v7, %v1821_v63  ;;  %v2411_v63 = vperm.slane %v982_v53, 0  ;;  %v2413_v3 = vperm.slane %v982_v53, 1 }
 0x2ed   : > { %1717 = vmatmul.msk.bf16.vlgmr.msra.gmra.mxu1 %vm429_vm1, %v958_v8  ;;  %1733 = vmatmul.msk.bf16.vlgmr.msrb.gmra.mxu0 %vm429_vm1, %v958_v8 }
 0x2f0   : > { %v1827_v19 = vpop.trf.xlu1 }
 0x2f1   : > { %v1831_v12 = vunpack.i.h.bf16 %v1827_v19  ;;  %v1828_v26 = vunpack.i.l.bf16 %v1827_v19 }
 0x2f8   : > { %v1832_v9 = vpop.trf.xlu1 }
 0x2f9   : > { %v1836_v50 = vunpack.i.h.bf16 %v1832_v9  ;;  %v1833_v49 = vunpack.i.l.bf16 %v1832_v9 }
 0x2fb   : > { %v959_v5 = vpack.c.bf16 %v1833_v49, %v1828_v26  ;;  %v2366_v6 = vpack.c.bf16 %v1836_v50, %v1831_v12 }
 0x2fd   : > { %1718 = vmatmul.msk.bf16.gmra.mxu1 %vm429_vm1, %v959_v5  ;;  %1726 = vmatmul.msk.bf16.vlgmr.msrb.gmra.mxu3 %vm429_vm1, %v2366_v6 }
 0x2fe   : > { %1734 = vmatmul.msk.bf16.gmra.mxu0 %vm429_vm1, %v959_v5 }
 0x300   : > { %v1837_v44 = vpop.trf.xlu1 }
 0x301   : > { %v1841_v13 = vunpack.i.h.bf16 %v1837_v44  ;;  %v1838_v60 = vunpack.i.l.bf16 %v1837_v44 }
 0x308   : > { %v1842_v14 = vpop.trf.xlu1 }
 0x309   : > { %v1846_v17 = vunpack.i.h.bf16 %v1842_v14  ;;  %v1843_v20 = vunpack.i.l.bf16 %v1842_v14 }
 0x30b   : > { %v960_v16 = vpack.c.bf16 %v1843_v20, %v1838_v60  ;;  %v2372_v21 = vpack.c.bf16 %v1846_v17, %v1841_v13 }
 0x30d   : > { %1719 = vmatmul.msk.bf16.gmra.mxu1 %vm429_vm1, %v960_v16  ;;  %1727 = vmatmul.msk.bf16.gmra.mxu3 %vm429_vm1, %v2372_v21 }
 0x30e   : > { %1735 = vmatmul.msk.bf16.gmra.mxu0 %vm429_vm1, %v960_v16 }
 0x310   : > { %v1847_v39 = vpop.trf.xlu1 }
 0x311   : > { %v1851_v41 = vunpack.i.h.bf16 %v1847_v39  ;;  %v1848_v54 = vunpack.i.l.bf16 %v1847_v39 }
 0x318   : > { %v1852_v42 = vpop.trf.xlu1 }
 0x319   : > { %v1856_v52 = vunpack.i.h.bf16 %v1852_v42  ;;  %v1853_v11 = vunpack.i.l.bf16 %v1852_v42 }
 0x31b   : > { %v961_v36 = vpack.c.bf16 %v1853_v11, %v1848_v54  ;;  %v2378_v2 = vpack.c.bf16 %v1856_v52, %v1851_v41 }
 0x31d   : > { %1720 = vmatmul.msk.bf16.gmra.mxu1 %vm429_vm1, %v961_v36  ;;  %1728 = vmatmul.msk.bf16.gmra.mxu3 %vm429_vm1, %v2378_v2 }
 0x31e   : > { %1736 = vmatmul.msk.bf16.gmra.mxu0 %vm429_vm1, %v961_v36 }
 0x320   : > { %v1857_v4 = vpop.trf.xlu1 }
 0x321   : > { %v1861_v56 = vunpack.i.h.bf16 %v1857_v4  ;;  %v1858_v37 = vunpack.i.l.bf16 %v1857_v4 }
 0x328   : > { %v1862_v24 = vpop.trf.xlu1 }
 0x329   : > { %v1866_v59 = vunpack.i.h.bf16 %v1862_v24  ;;  %v1863_v27 = vunpack.i.l.bf16 %v1862_v24 }
 0x32b   : > { %v962_v32 = vpack.c.bf16 %v1863_v27, %v1858_v37  ;;  %v2384_v34 = vpack.c.bf16 %v1866_v59, %v1861_v56 }
 0x32d   : > { %1721 = vmatmul.msk.bf16.gmra.mxu1 %vm429_vm1, %v962_v32  ;;  %1729 = vmatmul.msk.bf16.gmra.mxu3 %vm429_vm1, %v2384_v34 }
 0x32e   : > { %1737 = vmatmul.msk.bf16.gmra.mxu0 %vm429_vm1, %v962_v32 }
 0x330   : > { %v1867_v35 = vpop.trf.xlu1 }
 0x331   : > { %v1871_v38 = vunpack.i.h.bf16 %v1867_v35  ;;  %v1868_v33 = vunpack.i.l.bf16 %v1867_v35 }
 0x338   : > { %v1872_v28 = vpop.trf.xlu1 }
 0x339   : > { %v1876_v43 = vunpack.i.h.bf16 %v1872_v28  ;;  %v1873_v45 = vunpack.i.l.bf16 %v1872_v28 }
 0x33b   : > { %v963_v31 = vpack.c.bf16 %v1873_v45, %v1868_v33  ;;  %v2390_v0 = vpack.c.bf16 %v1876_v43, %v1871_v38 }
 0x33d   : > { %1722 = vmatmul.msk.bf16.gmra.mxu1 %vm429_vm1, %v963_v31  ;;  %1730 = vmatmul.msk.bf16.gmra.mxu3 %vm429_vm1, %v2390_v0 }
 0x33e   : > { %1738 = vmatmul.msk.bf16.gmra.mxu0 %vm429_vm1, %v963_v31 }
 0x340   : > { %v1877_v1 = vpop.trf.xlu1 }
 0x341   : > { %v1881_v25 = vunpack.i.h.bf16 %v1877_v1  ;;  %v1878_v29 = vunpack.i.l.bf16 %v1877_v1 }
 0x348   : > { %v1882_v30 = vpop.trf.xlu1 }
 0x349   : > { %v1886_v10 = vunpack.i.h.bf16 %v1882_v30  ;;  %v1883_v47 = vunpack.i.l.bf16 %v1882_v30 }
 0x34b   : > { %v964_v48 = vpack.c.bf16 %v1883_v47, %v1878_v29  ;;  %v2396_v51 = vpack.c.bf16 %v1886_v10, %v1881_v25 }
 0x34d   : > { %1723 = vmatmul.msk.bf16.gmra.mxu1 %vm429_vm1, %v964_v48  ;;  %1731 = vmatmul.msk.bf16.gmra.mxu3 %vm429_vm1, %v2396_v51 }
 0x34e   : > { %1739 = vmatmul.msk.bf16.gmra.mxu0 %vm429_vm1, %v964_v48 }
 0x350   : > { %v1887_v55 = vpop.trf.xlu1 }
 0x351   : > { %v1891_v46 = vunpack.i.h.bf16 %v1887_v55  ;;  %v1888_v15 = vunpack.i.l.bf16 %v1887_v55 }
 0x358   : > { %v1892_v57 = vpop.trf.xlu1 }
 0x359   : > { %v1896_v58 = vunpack.i.h.bf16 %v1892_v57  ;;  %v1893_v62 = vunpack.i.l.bf16 %v1892_v57 }
 0x35b   : > { %v965_v22 = vpack.c.bf16 %v1893_v62, %v1888_v15  ;;  %v2402_v23 = vpack.c.bf16 %v1896_v58, %v1891_v46 }
 0x35d   : > { %1724 = vmatmul.msk.bf16.gmra.mxu1 %vm429_vm1, %v965_v22  ;;  %1732 = vmatmul.msk.bf16.gmra.mxu3 %vm429_vm1, %v2402_v23 }
 0x35e   : > { %1740 = vmatmul.msk.bf16.vlgmr.msra.gmra.mxu2 %vm429_vm1, %v965_v22 }
 0x36a   : > { %v1085_v40 = vpop.f32.mrf.mxu1  ;;  %v1174_v7 = vpop.f32.mrf.mxu0 }
 0x36b   : > { %v1086_v61 = vadd.f32 %v1085_v40, %v2411_v63  ;;  %v1175_v8 = vadd.f32 %v1174_v7, %v2413_v3 }
 0x36d   : > { %v1254_v19 = vpack.c.bf16 %v1086_v61, %v1086_v61  ;;  %v1479_v12 = vpack.c.bf16 %v1175_v8, %v1175_v8  ;;  %1725 = vmatmul.msk.bf16.gmra.mxu1 %vm429_vm1, %v2362_v18 }
 0x36e   : > { %1741 = vmatmul.msk.bf16.gmra.mxu2 %vm429_vm1, %v2362_v18 }
 0x36f   : > { %1287 = vst.msk [vmem:[%s2421_s28] sm:$0xf] %vm1286_vm12, %v1254_v19  ;;  %1351 = vrot.lane.b32.xlu0 %v1254_v19, %s1927_s20 }
 0x370   : > { %1511 = vst.msk [vmem:[%s2427_s19] sm:$0xf] %vm1286_vm12, %v1479_v12 }
 0x372   : > { %v1087_v26 = vpop.f32.mrf.mxu1  ;;  %v1176_v9 = vpop.f32.mrf.mxu0 }
 0x373   : > { %v1088_v50 = vadd.f32 %v1087_v26, %v2411_v63  ;;  %v1177_v49 = vadd.f32 %v1176_v9, %v2413_v3 }
 0x375   : > { %v1255_v5 = vpack.c.bf16 %v1088_v50, %v1088_v50  ;;  %v1480_v44 = vpack.c.bf16 %v1177_v49, %v1177_v49 }
 0x377   : > { %1288 = vst.msk [vmem:[%s2421_s28 + $0x4] sm:$0xf] %vm1286_vm12, %v1255_v5  ;;  %1353 = vrot.lane.b32.xlu2 %v1255_v5, %s1927_s20 }
 0x378   : > { %1512 = vst.msk [vmem:[%s2427_s19 + $0x4] sm:$0xf] %vm1286_vm12, %v1480_v44 }
 0x37a   : > { %v1090_v18 = vpop.f32.mrf.mxu1 }
 0x37b   : > { %v1091_v13 = vadd.f32 %v1090_v18, %v2411_v63  ;;  %v1179_v60 = vpop.f32.mrf.mxu0 }
 0x37c   : > { %v1180_v14 = vadd.f32 %v1179_v60, %v2413_v3 }
 0x37d   : > { %v1256_v17 = vpack.c.bf16 %v1091_v13, %v1091_v13 }
 0x37e   : > { %v1481_v20 = vpack.c.bf16 %v1180_v14, %v1180_v14  ;;  %1742 = vmatmul.msk.bf16.gmra.mxu2 %vm429_vm1, %v2366_v6 }
 0x37f   : > { %1289 = vst.msk [vmem:[%s2421_s28 + $0x8] sm:$0xf] %vm1286_vm12, %v1256_v17  ;;  %1355 = vrot.lane.b32.xlu0 %v1256_v17, %s1927_s20 }
 0x380   : > { %1513 = vst.msk [vmem:[%s2427_s19 + $0x8] sm:$0xf] %vm1286_vm12, %v1481_v20  ;;  %v1130_v16 = vpop.f32.mrf.mxu3 }
 0x381   : > { %v1131_v39 = vadd.f32 %v1130_v16, %v2411_v63 }
 0x382   : > { %v1092_v41 = vpop.f32.mrf.mxu1 }
 0x383   : > { %v1272_v54 = vpack.c.bf16 %v1131_v39, %v1131_v39  ;;  %v1093_v42 = vadd.f32 %v1092_v41, %v2411_v63  ;;  %v1181_v52 = vpop.f32.mrf.mxu0 }
 0x384   : > { %v1182_v11 = vadd.f32 %v1181_v52, %v2413_v3 }
 0x385   : > { %1305 = vst.msk [vmem:[%s2421_s28 + $0x48] sm:$0xf] %vm1286_vm12, %v1272_v54  ;;  %v1257_v6 = vpack.c.bf16 %v1093_v42, %v1093_v42 }
 0x386   : > { %v1482_v36 = vpack.c.bf16 %v1182_v11, %v1182_v11 }
 0x387   : > { %1290 = vst.msk [vmem:[%s2421_s28 + $0xc] sm:$0xf] %vm1286_vm12, %v1257_v6  ;;  %1357 = vrot.lane.b32.xlu2 %v1257_v6, %s1927_s20  ;;  %1387 = vrot.lane.b32.xlu0 %v1272_v54, %s1927_s20 }
 0x388   : > { %1514 = vst.msk [vmem:[%s2427_s19 + $0xc] sm:$0xf] %vm1286_vm12, %v1482_v36  ;;  %v1132_v4 = vpop.f32.mrf.mxu3 }
 0x389   : > { %v1133_v56 = vadd.f32 %v1132_v4, %v2411_v63 }
 0x38a   : > { %v1095_v37 = vpop.f32.mrf.mxu1 }
 0x38b   : > { %v1273_v24 = vpack.c.bf16 %v1133_v56, %v1133_v56  ;;  %v1096_v59 = vadd.f32 %v1095_v37, %v2411_v63  ;;  %v1184_v27 = vpop.f32.mrf.mxu0 }
 0x38c   : > { %v1185_v32 = vadd.f32 %v1184_v27, %v2413_v3 }
 0x38d   : > { %1306 = vst.msk [vmem:[%s2421_s28 + $0x4c] sm:$0xf] %vm1286_vm12, %v1273_v24  ;;  %v1258_v35 = vpack.c.bf16 %v1096_v59, %v1096_v59 }
 0x38e   : > { %v1483_v38 = vpack.c.bf16 %v1185_v32, %v1185_v32  ;;  %1743 = vmatmul.msk.bf16.gmra.mxu2 %vm429_vm1, %v2372_v21 }
 0x38f   : > { %1291 = vst.msk [vmem:[%s2421_s28 + $0x10] sm:$0xf] %vm1286_vm12, %v1258_v35  ;;  %1389 = vrot.lane.b32.xlu2 %v1273_v24, %s1927_s20  ;;  %1359 = vrot.lane.b32.xlu0 %v1258_v35, %s1927_s20 }
 0x390   : > { %1515 = vst.msk [vmem:[%s2427_s19 + $0x10] sm:$0xf] %vm1286_vm12, %v1483_v38  ;;  %v1135_v33 = vpop.f32.mrf.mxu3 }
 0x391   : > { %v1136_v28 = vadd.f32 %v1135_v33, %v2411_v63 }
 0x392   : > { %v1097_v43 = vpop.f32.mrf.mxu1 }
 0x393   : > { %v1274_v45 = vpack.c.bf16 %v1136_v28, %v1136_v28  ;;  %v1098_v31 = vadd.f32 %v1097_v43, %v2411_v63  ;;  %v1186_v1 = vpop.f32.mrf.mxu0 }
 0x394   : > { %v1187_v21 = vadd.f32 %v1186_v1, %v2413_v3 }
 0x395   : > { %1307 = vst.msk [vmem:[%s2421_s28 + $0x50] sm:$0xf] %vm1286_vm12, %v1274_v45  ;;  %v1259_v25 = vpack.c.bf16 %v1098_v31, %v1098_v31 }
 0x396   : > { %v1484_v29 = vpack.c.bf16 %v1187_v21, %v1187_v21 }
 0x397   : > { %1292 = vst.msk [vmem:[%s2421_s28 + $0x14] sm:$0xf] %vm1286_vm12, %v1259_v25  ;;  %1361 = vrot.lane.b32.xlu2 %v1259_v25, %s1927_s20  ;;  %1391 = vrot.lane.b32.xlu0 %v1274_v45, %s1927_s20 }
 0x398   : > { %1516 = vst.msk [vmem:[%s2427_s19 + $0x14] sm:$0xf] %vm1286_vm12, %v1484_v29  ;;  %v1137_v30 = vpop.f32.mrf.mxu3 }
 0x399   : > { %v1138_v10 = vadd.f32 %v1137_v30, %v2411_v63 }
 0x39a   : > { %v1100_v47 = vpop.f32.mrf.mxu1 }
 0x39b   : > { %v1275_v48 = vpack.c.bf16 %v1138_v10, %v1138_v10  ;;  %v1101_v55 = vadd.f32 %v1100_v47, %v2411_v63  ;;  %v1189_v46 = vpop.f32.mrf.mxu0 }
 0x39c   : > { %v1190_v15 = vadd.f32 %v1189_v46, %v2413_v3 }
 0x39d   : > { %1308 = vst.msk [vmem:[%s2421_s28 + $0x54] sm:$0xf] %vm1286_vm12, %v1275_v48  ;;  %v1260_v57 = vpack.c.bf16 %v1101_v55, %v1101_v55 }
 0x39e   : > { %v1485_v58 = vpack.c.bf16 %v1190_v15, %v1190_v15  ;;  %1744 = vmatmul.msk.bf16.gmra.mxu2 %vm429_vm1, %v2378_v2 }
 0x39f   : > { %1293 = vst.msk [vmem:[%s2421_s28 + $0x18] sm:$0xf] %vm1286_vm12, %v1260_v57  ;;  %1393 = vrot.lane.b32.xlu2 %v1275_v48, %s1927_s20  ;;  %1363 = vrot.lane.b32.xlu0 %v1260_v57, %s1927_s20 }
 0x3a0   : > { %1517 = vst.msk [vmem:[%s2427_s19 + $0x18] sm:$0xf] %vm1286_vm12, %v1485_v58  ;;  %v1140_v62 = vpop.f32.mrf.mxu3 }
 0x3a1   : > { %v1141_v22 = vadd.f32 %v1140_v62, %v2411_v63 }
 0x3a2   : > { %v1102_v53 = vpop.f32.mrf.mxu1 }
 0x3a3   : > { %v1276_v40 = vpack.c.bf16 %v1141_v22, %v1141_v22  ;;  %v1103_v7 = vadd.f32 %v1102_v53, %v2411_v63  ;;  %v1191_v61 = vpop.f32.mrf.mxu0 }
 0x3a4   : > { %v1192_v2 = vadd.f32 %v1191_v61, %v2413_v3 }
 0x3a5   : > { %1309 = vst.msk [vmem:[%s2421_s28 + $0x58] sm:$0xf] %vm1286_vm12, %v1276_v40  ;;  %v1261_v8 = vpack.c.bf16 %v1103_v7, %v1103_v7 }
 0x3a6   : > { %v1486_v19 = vpack.c.bf16 %v1192_v2, %v1192_v2 }
 0x3a7   : > { %1294 = vst.msk [vmem:[%s2421_s28 + $0x1c] sm:$0xf] %vm1286_vm12, %v1261_v8  ;;  %1365 = vrot.lane.b32.xlu2 %v1261_v8, %s1927_s20  ;;  %1395 = vrot.lane.b32.xlu0 %v1276_v40, %s1927_s20 }
 0x3a8   : > { %1518 = vst.msk [vmem:[%s2427_s19 + $0x1c] sm:$0xf] %vm1286_vm12, %v1486_v19  ;;  %v1142_v12 = vpop.f32.mrf.mxu3 }
 0x3a9   : > { %v1143_v26 = vadd.f32 %v1142_v12, %v2411_v63 }
 0x3aa   : > { %v1105_v9 = vpop.f32.mrf.mxu1 }
 0x3ab   : > { %v1277_v50 = vpack.c.bf16 %v1143_v26, %v1143_v26  ;;  %v1106_v49 = vadd.f32 %v1105_v9, %v2411_v63  ;;  %v1194_v5 = vpop.f32.mrf.mxu0 }
 0x3ac   : > { %v1195_v44 = vadd.f32 %v1194_v5, %v2413_v3 }
 0x3ad   : > { %1310 = vst.msk [vmem:[%s2421_s28 + $0x5c] sm:$0xf] %vm1286_vm12, %v1277_v50  ;;  %v1262_v18 = vpack.c.bf16 %v1106_v49, %v1106_v49 }
 0x3ae   : > { %v1487_v13 = vpack.c.bf16 %v1195_v44, %v1195_v44  ;;  %1745 = vmatmul.msk.bf16.gmra.mxu2 %vm429_vm1, %v2384_v34 }
 0x3af   : > { %1295 = vst.msk [vmem:[%s2421_s28 + $0x20] sm:$0xf] %vm1286_vm12, %v1262_v18  ;;  %1397 = vrot.lane.b32.xlu2 %v1277_v50, %s1927_s20  ;;  %1367 = vrot.lane.b32.xlu0 %v1262_v18, %s1927_s20 }
 0x3b0   : > { %1519 = vst.msk [vmem:[%s2427_s19 + $0x20] sm:$0xf] %vm1286_vm12, %v1487_v13  ;;  %v1145_v60 = vpop.f32.mrf.mxu3 }
 0x3b1   : > { %v1146_v14 = vadd.f32 %v1145_v60, %v2411_v63 }
 0x3b2   : > { %v1107_v17 = vpop.f32.mrf.mxu1 }
 0x3b3   : > { %v1278_v20 = vpack.c.bf16 %v1146_v14, %v1146_v14  ;;  %v1108_v16 = vadd.f32 %v1107_v17, %v2411_v63  ;;  %v1196_v39 = vpop.f32.mrf.mxu0 }
 0x3b4   : > { %v1197_v34 = vadd.f32 %v1196_v39, %v2413_v3 }
 0x3b5   : > { %1311 = vst.msk [vmem:[%s2421_s28 + $0x60] sm:$0xf] %vm1286_vm12, %v1278_v20  ;;  %v1263_v41 = vpack.c.bf16 %v1108_v16, %v1108_v16 }
 0x3b6   : > { %v1488_v54 = vpack.c.bf16 %v1197_v34, %v1197_v34 }
 0x3b7   : > { %1296 = vst.msk [vmem:[%s2421_s28 + $0x24] sm:$0xf] %vm1286_vm12, %v1263_v41  ;;  %1369 = vrot.lane.b32.xlu2 %v1263_v41, %s1927_s20  ;;  %1399 = vrot.lane.b32.xlu0 %v1278_v20, %s1927_s20 }
 0x3b8   : > { %1520 = vst.msk [vmem:[%s2427_s19 + $0x24] sm:$0xf] %vm1286_vm12, %v1488_v54  ;;  %v1147_v42 = vpop.f32.mrf.mxu3 }
 0x3b9   : > { %v1148_v52 = vadd.f32 %v1147_v42, %v2411_v63 }
 0x3ba   : > { %v1110_v11 = vpop.f32.mrf.mxu1 }
 0x3bb   : > { %v1279_v6 = vpack.c.bf16 %v1148_v52, %v1148_v52  ;;  %v1111_v36 = vadd.f32 %v1110_v11, %v2411_v63  ;;  %v1199_v4 = vpop.f32.mrf.mxu0 }
 0x3bc   : > { %v1200_v56 = vadd.f32 %v1199_v4, %v2413_v3 }
 0x3bd   : > { %1312 = vst.msk [vmem:[%s2421_s28 + $0x64] sm:$0xf] %vm1286_vm12, %v1279_v6  ;;  %v1264_v37 = vpack.c.bf16 %v1111_v36, %v1111_v36 }
 0x3be   : > { %v1489_v24 = vpack.c.bf16 %v1200_v56, %v1200_v56  ;;  %1746 = vmatmul.msk.bf16.gmra.mxu2 %vm429_vm1, %v2390_v0 }
 0x3bf   : > { %1297 = vst.msk [vmem:[%s2421_s28 + $0x28] sm:$0xf] %vm1286_vm12, %v1264_v37  ;;  %1401 = vrot.lane.b32.xlu2 %v1279_v6, %s1927_s20  ;;  %1371 = vrot.lane.b32.xlu0 %v1264_v37, %s1927_s20 }
 0x3c0   : > { %1521 = vst.msk [vmem:[%s2427_s19 + $0x28] sm:$0xf] %vm1286_vm12, %v1489_v24  ;;  %v1150_v59 = vpop.f32.mrf.mxu3 }
 0x3c1   : > { %v1151_v27 = vadd.f32 %v1150_v59, %v2411_v63 }
 0x3c2   : > { %v1112_v32 = vpop.f32.mrf.mxu1 }
 0x3c3   : > { %v1280_v35 = vpack.c.bf16 %v1151_v27, %v1151_v27  ;;  %v1113_v38 = vadd.f32 %v1112_v32, %v2411_v63  ;;  %v1201_v33 = vpop.f32.mrf.mxu0 }
 0x3c4   : > { %v1202_v0 = vadd.f32 %v1201_v33, %v2413_v3 }
 0x3c5   : > { %1313 = vst.msk [vmem:[%s2421_s28 + $0x68] sm:$0xf] %vm1286_vm12, %v1280_v35  ;;  %v1265_v28 = vpack.c.bf16 %v1113_v38, %v1113_v38 }
 0x3c6   : > { %v1490_v43 = vpack.c.bf16 %v1202_v0, %v1202_v0 }
 0x3c7   : > { %1298 = vst.msk [vmem:[%s2421_s28 + $0x2c] sm:$0xf] %vm1286_vm12, %v1265_v28  ;;  %1373 = vrot.lane.b32.xlu2 %v1265_v28, %s1927_s20  ;;  %1403 = vrot.lane.b32.xlu0 %v1280_v35, %s1927_s20 }
 0x3c8   : > { %1522 = vst.msk [vmem:[%s2427_s19 + $0x2c] sm:$0xf] %vm1286_vm12, %v1490_v43  ;;  %v1152_v45 = vpop.f32.mrf.mxu3 }
 0x3c9   : > { %v1153_v31 = vadd.f32 %v1152_v45, %v2411_v63 }
 0x3ca   : > { %v1115_v1 = vpop.f32.mrf.mxu1 }
 0x3cb   : > { %v1281_v21 = vpack.c.bf16 %v1153_v31, %v1153_v31  ;;  %v1116_v25 = vadd.f32 %v1115_v1, %v2411_v63  ;;  %v1204_v29 = vpop.f32.mrf.mxu0 }
 0x3cc   : > { %v1205_v30 = vadd.f32 %v1204_v29, %v2413_v3 }
 0x3cd   : > { %1314 = vst.msk [vmem:[%s2421_s28 + $0x6c] sm:$0xf] %vm1286_vm12, %v1281_v21  ;;  %v1266_v10 = vpack.c.bf16 %v1116_v25, %v1116_v25  ;;  %1405 = vrot.lane.b32.xlu1 %v1281_v21, %s1927_s20 }
 0x3ce   : > { %v1491_v47 = vpack.c.bf16 %v1205_v30, %v1205_v30  ;;  %1747 = vmatmul.msk.bf16.gmra.mxu2 %vm429_vm1, %v2396_v51 }
 0x3cf   : > { %1299 = vst.msk [vmem:[%s2421_s28 + $0x30] sm:$0xf] %vm1286_vm12, %v1266_v10  ;;  %1375 = vrot.lane.b32.xlu0 %v1266_v10, %s1927_s20 }
 0x3d0   : > { %1523 = vst.msk [vmem:[%s2427_s19 + $0x30] sm:$0xf] %vm1286_vm12, %v1491_v47  ;;  %v1155_v48 = vpop.f32.mrf.mxu3 }
 0x3d1   : > { %v1156_v55 = vadd.f32 %v1155_v48, %v2411_v63  ;;  %v1354_v46 = vpop.permute.xlu2 %1353 }
 0x3d2   : > { %1448 = vst.msk [vmem:[%s2576_s23 + $0x4] sm:$0xf] %vm1286_vm12, %v1354_v46  ;;  %v1117_v51 = vpop.f32.mrf.mxu1 }
 0x3d3   : > { %v1282_v15 = vpack.c.bf16 %v1156_v55, %v1156_v55  ;;  %v1118_v57 = vadd.f32 %v1117_v51, %v2411_v63  ;;  %v1206_v58 = vpop.f32.mrf.mxu0 }
 0x3d4   : > { %v1207_v62 = vadd.f32 %v1206_v58, %v2413_v3 }
 0x3d5   : > { %1315 = vst.msk [vmem:[%s2421_s28 + $0x70] sm:$0xf] %vm1286_vm12, %v1282_v15  ;;  %v1267_v22 = vpack.c.bf16 %v1118_v57, %v1118_v57  ;;  %1407 = vrot.lane.b32.xlu2 %v1282_v15, %s1927_s20 }
 0x3d6   : > { %v1492_v53 = vpack.c.bf16 %v1207_v62, %v1207_v62 }
 0x3d7   : > { %1300 = vst.msk [vmem:[%s2421_s28 + $0x34] sm:$0xf] %vm1286_vm12, %v1267_v22 }
 0x3d8   : > { %1524 = vst.msk [vmem:[%s2427_s19 + $0x34] sm:$0xf] %vm1286_vm12, %v1492_v53  ;;  %v1157_v40 = vpop.f32.mrf.mxu3 }
 0x3d9   : > { %v1158_v7 = vadd.f32 %v1157_v40, %v2411_v63 }
 0x3da   : > { %v1120_v61 = vpop.f32.mrf.mxu1 }
 0x3db   : > { %v1283_v2 = vpack.c.bf16 %v1158_v7, %v1158_v7  ;;  %v1121_v8 = vadd.f32 %v1120_v61, %v2411_v63 }
 0x3dd   : > { %1316 = vst.msk [vmem:[%s2421_s28 + $0x74] sm:$0xf] %vm1286_vm12, %v1283_v2  ;;  %v1268_v19 = vpack.c.bf16 %v1121_v8, %v1121_v8  ;;  %1377 = vrot.lane.b32.xlu2 %v1267_v22, %s1927_s20  ;;  %1409 = vrot.lane.b32.xlu0 %v1283_v2, %s1927_s20 }
 0x3de   : > { %1748 = vmatmul.msk.bf16.gmra.mxu2 %vm429_vm1, %v2402_v23 }
 0x3df   : > { %1301 = vst.msk [vmem:[%s2421_s28 + $0x38] sm:$0xf] %vm1286_vm12, %v1268_v19 }
 0x3e0   : > { %v1160_v12 = vpop.f32.mrf.mxu3 }
 0x3e1   : > { %v1161_v26 = vadd.f32 %v1160_v12, %v2411_v63  ;;  %v1209_v9 = vpop.f32.mrf.mxu2  ;;  %v1358_v50 = vpop.permute.xlu2 %1357 }
 0x3e2   : > { %v1210_v49 = vadd.f32 %v1209_v9, %v2413_v3  ;;  %1450 = vst.msk [vmem:[%s2576_s23 + $0xc] sm:$0xf] %vm1286_vm12, %v1358_v50  ;;  %v1352_v5 = vpop.permute.xlu0 %1351  ;;  %v1122_v44 = vpop.f32.mrf.mxu1 }
 0x3e3   : > { %v1284_v18 = vpack.c.bf16 %v1161_v26, %v1161_v26  ;;  %1447 = vst.msk [vmem:[%s2576_s23] sm:$0xf] %vm1286_vm12, %v1352_v5  ;;  %v1123_v23 = vadd.f32 %v1122_v44, %v2411_v63 }
 0x3e4   : > { %v1493_v13 = vpack.c.bf16 %v1210_v49, %v1210_v49 }
 0x3e5   : > { %1317 = vst.msk [vmem:[%s2421_s28 + $0x78] sm:$0xf] %vm1286_vm12, %v1284_v18  ;;  %v1269_v60 = vpack.c.bf16 %v1123_v23, %v1123_v23  ;;  %1379 = vrot.lane.b32.xlu0 %v1268_v19, %s1927_s20 }
 0x3e6   : > { %1525 = vst.msk [vmem:[%s2427_s19 + $0x38] sm:$0xf] %vm1286_vm12, %v1493_v13 }
 0x3e7   : > { %1302 = vst.msk [vmem:[%s2421_s28 + $0x3c] sm:$0xf] %vm1286_vm12, %v1269_v60  ;;  %1381 = vrot.lane.b32.xlu2 %v1269_v60, %s1927_s20 }
 0x3e8   : > { %v1162_v14 = vpop.f32.mrf.mxu3 }
 0x3e9   : > { %v1163_v17 = vadd.f32 %v1162_v14, %v2411_v63  ;;  %v1211_v20 = vpop.f32.mrf.mxu2  ;;  %v1390_v16 = vpop.permute.xlu2 %1389 }
 0x3ea   : > { %v1212_v39 = vadd.f32 %v1211_v20, %v2413_v3  ;;  %1466 = vst.msk [vmem:[%s2576_s23 + $0x4c] sm:$0xf] %vm1286_vm12, %v1390_v16  ;;  %v1125_v34 = vpop.f32.mrf.mxu1 }
 0x3eb   : > { %v1285_v41 = vpack.c.bf16 %v1163_v17, %v1163_v17  ;;  %v1126_v54 = vadd.f32 %v1125_v34, %v2411_v63 }
 0x3ec   : > { %v1494_v42 = vpack.c.bf16 %v1212_v39, %v1212_v39 }
 0x3ed   : > { %1318 = vst.msk [vmem:[%s2421_s28 + $0x7c] sm:$0xf] %vm1286_vm12, %v1285_v41  ;;  %v1270_v52 = vpack.c.bf16 %v1126_v54, %v1126_v54 }
 0x3ee   : > { %1526 = vst.msk [vmem:[%s2427_s19 + $0x3c] sm:$0xf] %vm1286_vm12, %v1494_v42 }
 0x3ef   : > { %1303 = vst.msk [vmem:[%s2421_s28 + $0x40] sm:$0xf] %vm1286_vm12, %v1270_v52  ;;  %1383 = vrot.lane.b32.xlu0 %v1270_v52, %s1927_s20 }
 0x3f1   : > { %v1214_v11 = vpop.f32.mrf.mxu2  ;;  %v1362_v6 = vpop.permute.xlu2 %1361 }
 0x3f2   : > { %v1215_v36 = vadd.f32 %v1214_v11, %v2413_v3  ;;  %1452 = vst.msk [vmem:[%s2576_s23 + $0x14] sm:$0xf] %vm1286_vm12, %v1362_v6  ;;  %v1356_v4 = vpop.permute.xlu0 %1355  ;;  %v1127_v56 = vpop.f32.mrf.mxu1 }
 0x3f3   : > { %1449 = vst.msk [vmem:[%s2576_s23 + $0x8] sm:$0xf] %vm1286_vm12, %v1356_v4  ;;  %v1128_v37 = vadd.f32 %v1127_v56, %v2411_v63 }
 0x3f4   : > { %v1495_v24 = vpack.c.bf16 %v1215_v36, %v1215_v36 }
 0x3f5   : > { %v1271_v59 = vpack.c.bf16 %v1128_v37, %v1128_v37 }
 0x3f6   : > { %1527 = vst.msk [vmem:[%s2427_s19 + $0x40] sm:$0xf] %vm1286_vm12, %v1495_v24 }
 0x3f7   : > { %1304 = vst.msk [vmem:[%s2421_s28 + $0x44] sm:$0xf] %vm1286_vm12, %v1271_v59  ;;  %1385 = vrot.lane.b32.xlu2 %v1271_v59, %s1927_s20  ;;  %1413 = vrot.lane.b32.xlu0 %v1285_v41, %s1927_s20 }
 0x3f9   : > { %v1216_v27 = vpop.f32.mrf.mxu2  ;;  %v1394_v32 = vpop.permute.xlu2 %1393 }
 0x3fa   : > { %v1217_v35 = vadd.f32 %v1216_v27, %v2413_v3  ;;  %1468 = vst.msk [vmem:[%s2576_s23 + $0x54] sm:$0xf] %vm1286_vm12, %v1394_v32  ;;  %v1388_v63 = vpop.permute.xlu0 %1387 }
 0x3fb   : > { %1465 = vst.msk [vmem:[%s2576_s23 + $0x48] sm:$0xf] %vm1286_vm12, %v1388_v63 }
 0x3fc   : > { %v1496_v38 = vpack.c.bf16 %v1217_v35, %v1217_v35 }
 0x3fe   : > { %1528 = vst.msk [vmem:[%s2427_s19 + $0x44] sm:$0xf] %vm1286_vm12, %v1496_v38 }
 0x3ff   : > { %1411 = vrot.lane.b32.xlu2 %v1284_v18, %s1927_s20 }
 0x401   : > { %v1219_v33 = vpop.f32.mrf.mxu2  ;;  %v1366_v0 = vpop.permute.xlu2 %1365 }
 0x402   : > { %v1220_v28 = vadd.f32 %v1219_v33, %v2413_v3  ;;  %1454 = vst.msk [vmem:[%s2576_s23 + $0x1c] sm:$0xf] %vm1286_vm12, %v1366_v0  ;;  %v1360_v43 = vpop.permute.xlu0 %1359 }
 0x403   : > { %1451 = vst.msk [vmem:[%s2576_s23 + $0x10] sm:$0xf] %vm1286_vm12, %v1360_v43 }
 0x404   : > { %v1497_v45 = vpack.c.bf16 %v1220_v28, %v1220_v28 }
 0x406   : > { %1529 = vst.msk [vmem:[%s2427_s19 + $0x48] sm:$0xf] %vm1286_vm12, %v1497_v45 }
 0x409   : > { %v1221_v31 = vpop.f32.mrf.mxu2  ;;  %v1398_v1 = vpop.permute.xlu2 %1397 }
 0x40a   : > { %v1222_v21 = vadd.f32 %v1221_v31, %v2413_v3  ;;  %1470 = vst.msk [vmem:[%s2576_s23 + $0x5c] sm:$0xf] %vm1286_vm12, %v1398_v1  ;;  %v1392_v25 = vpop.permute.xlu0 %1391 }
 0x40b   : > { %1467 = vst.msk [vmem:[%s2576_s23 + $0x50] sm:$0xf] %vm1286_vm12, %v1392_v25 }
 0x40c   : > { %v1498_v29 = vpack.c.bf16 %v1222_v21, %v1222_v21 }
 0x40e   : > { %1530 = vst.msk [vmem:[%s2427_s19 + $0x4c] sm:$0xf] %vm1286_vm12, %v1498_v29 }
 0x411   : > { %v1224_v30 = vpop.f32.mrf.mxu2  ;;  %v1370_v10 = vpop.permute.xlu2 %1369 }
 0x412   : > { %v1225_v47 = vadd.f32 %v1224_v30, %v2413_v3  ;;  %1456 = vst.msk [vmem:[%s2576_s23 + $0x24] sm:$0xf] %vm1286_vm12, %v1370_v10  ;;  %v1364_v48 = vpop.permute.xlu0 %1363 }
 0x413   : > { %1453 = vst.msk [vmem:[%s2576_s23 + $0x18] sm:$0xf] %vm1286_vm12, %v1364_v48 }
 0x414   : > { %v1499_v55 = vpack.c.bf16 %v1225_v47, %v1225_v47 }
 0x416   : > { %1531 = vst.msk [vmem:[%s2427_s19 + $0x50] sm:$0xf] %vm1286_vm12, %v1499_v55 }
 0x419   : > { %v1226_v46 = vpop.f32.mrf.mxu2  ;;  %v1402_v51 = vpop.permute.xlu2 %1401 }
 0x41a   : > { %v1227_v15 = vadd.f32 %v1226_v46, %v2413_v3  ;;  %1472 = vst.msk [vmem:[%s2576_s23 + $0x64] sm:$0xf] %vm1286_vm12, %v1402_v51  ;;  %v1396_v57 = vpop.permute.xlu0 %1395 }
 0x41b   : > { %1469 = vst.msk [vmem:[%s2576_s23 + $0x58] sm:$0xf] %vm1286_vm12, %v1396_v57 }
 0x41c   : > { %v1500_v58 = vpack.c.bf16 %v1227_v15, %v1227_v15 }
 0x41e   : > { %1532 = vst.msk [vmem:[%s2427_s19 + $0x54] sm:$0xf] %vm1286_vm12, %v1500_v58 }
 0x421   : > { %v1229_v62 = vpop.f32.mrf.mxu2  ;;  %v1374_v22 = vpop.permute.xlu2 %1373 }
 0x422   : > { %v1230_v53 = vadd.f32 %v1229_v62, %v2413_v3  ;;  %1458 = vst.msk [vmem:[%s2576_s23 + $0x2c] sm:$0xf] %vm1286_vm12, %v1374_v22  ;;  %v1368_v40 = vpop.permute.xlu0 %1367 }
 0x423   : > { %1455 = vst.msk [vmem:[%s2576_s23 + $0x20] sm:$0xf] %vm1286_vm12, %v1368_v40 }
 0x424   : > { %v1501_v7 = vpack.c.bf16 %v1230_v53, %v1230_v53 }
 0x426   : > { %1533 = vst.msk [vmem:[%s2427_s19 + $0x58] sm:$0xf] %vm1286_vm12, %v1501_v7 }
 0x429   : > { %v1231_v61 = vpop.f32.mrf.mxu2 }
 0x42a   : > { %v1232_v2 = vadd.f32 %v1231_v61, %v2413_v3  ;;  %v1400_v8 = vpop.permute.xlu0 %1399 }
 0x42b   : > { %1471 = vst.msk [vmem:[%s2576_s23 + $0x60] sm:$0xf] %vm1286_vm12, %v1400_v8 }
 0x42c   : > { %v1502_v19 = vpack.c.bf16 %v1232_v2, %v1232_v2 }
 0x42e   : > { %1534 = vst.msk [vmem:[%s2427_s19 + $0x5c] sm:$0xf] %vm1286_vm12, %v1502_v19 }
 0x42f   : > { %v1408_v12 = vpop.permute.xlu2 %1407 }
 0x430   : > { %1475 = vst.msk [vmem:[%s2576_s23 + $0x70] sm:$0xf] %vm1286_vm12, %v1408_v12 }
 0x431   : > { %v1234_v26 = vpop.f32.mrf.mxu2 }
 0x432   : > { %v1235_v9 = vadd.f32 %v1234_v26, %v2413_v3  ;;  %v1372_v50 = vpop.permute.xlu0 %1371 }
 0x433   : > { %1457 = vst.msk [vmem:[%s2576_s23 + $0x28] sm:$0xf] %vm1286_vm12, %v1372_v50 }
 0x434   : > { %v1503_v49 = vpack.c.bf16 %v1235_v9, %v1235_v9 }
 0x436   : > { %1535 = vst.msk [vmem:[%s2427_s19 + $0x60] sm:$0xf] %vm1286_vm12, %v1503_v49 }
 0x437   : > { %v1378_v5 = vpop.permute.xlu2 %1377 }
 0x438   : > { %1460 = vst.msk [vmem:[%s2576_s23 + $0x34] sm:$0xf] %vm1286_vm12, %v1378_v5 }
 0x439   : > { %v1236_v44 = vpop.f32.mrf.mxu2 }
 0x43a   : > { %v1237_v18 = vadd.f32 %v1236_v44, %v2413_v3  ;;  %v1404_v23 = vpop.permute.xlu0 %1403 }
 0x43b   : > { %1473 = vst.msk [vmem:[%s2576_s23 + $0x68] sm:$0xf] %vm1286_vm12, %v1404_v23 }
 0x43c   : > { %v1504_v13 = vpack.c.bf16 %v1237_v18, %v1237_v18 }
 0x43e   : > { %1536 = vst.msk [vmem:[%s2427_s19 + $0x64] sm:$0xf] %vm1286_vm12, %v1504_v13 }
 0x43f   : > { %v1406_v60 = vpop.permute.xlu1 %1405 }
 0x440   : > { %1474 = vst.msk [vmem:[%s2576_s23 + $0x6c] sm:$0xf] %vm1286_vm12, %v1406_v60 }
 0x441   : > { %v1239_v14 = vpop.f32.mrf.mxu2  ;;  %v1382_v17 = vpop.permute.xlu2 %1381 }
 0x442   : > { %v1240_v20 = vadd.f32 %v1239_v14, %v2413_v3  ;;  %1462 = vst.msk [vmem:[%s2576_s23 + $0x3c] sm:$0xf] %vm1286_vm12, %v1382_v17  ;;  %v1376_v16 = vpop.permute.xlu0 %1375 }
 0x443   : > { %1459 = vst.msk [vmem:[%s2576_s23 + $0x30] sm:$0xf] %vm1286_vm12, %v1376_v16 }
 0x444   : > { %v1505_v39 = vpack.c.bf16 %v1240_v20, %v1240_v20 }
 0x446   : > { %1537 = vst.msk [vmem:[%s2427_s19 + $0x68] sm:$0xf] %vm1286_vm12, %v1505_v39 }
 0x449   : > { %v1241_v34 = vpop.f32.mrf.mxu2 }
 0x44a   : > { %v1242_v41 = vadd.f32 %v1241_v34, %v2413_v3 }
 0x44c   : > { %v1506_v54 = vpack.c.bf16 %v1242_v41, %v1242_v41 }
 0x44e   : > { %1538 = vst.msk [vmem:[%s2427_s19 + $0x6c] sm:$0xf] %vm1286_vm12, %v1506_v54 }
 0x44f   : > { %v1410_v42 = vpop.permute.xlu0 %1409 }
 0x450   : > { %1476 = vst.msk [vmem:[%s2576_s23 + $0x74] sm:$0xf] %vm1286_vm12, %v1410_v42 }
 0x451   : > { %v1244_v52 = vpop.f32.mrf.mxu2  ;;  %v1386_v11 = vpop.permute.xlu2 %1385 }
 0x452   : > { %v1245_v6 = vadd.f32 %v1244_v52, %v2413_v3  ;;  %1464 = vst.msk [vmem:[%s2576_s23 + $0x44] sm:$0xf] %vm1286_vm12, %v1386_v11 }
 0x454   : > { %v1507_v36 = vpack.c.bf16 %v1245_v6, %v1245_v6 }
 0x456   : > { %1539 = vst.msk [vmem:[%s2427_s19 + $0x70] sm:$0xf] %vm1286_vm12, %v1507_v36 }
 0x457   : > { %v1380_v4 = vpop.permute.xlu0 %1379 }
 0x458   : > { %1461 = vst.msk [vmem:[%s2576_s23 + $0x38] sm:$0xf] %vm1286_vm12, %v1380_v4 }
 0x459   : > { %v1246_v56 = vpop.f32.mrf.mxu2  ;;  %v1412_v37 = vpop.permute.xlu2 %1411 }
 0x45a   : > { %v1247_v24 = vadd.f32 %v1246_v56, %v2413_v3  ;;  %1477 = vst.msk [vmem:[%s2576_s23 + $0x78] sm:$0xf] %vm1286_vm12, %v1412_v37 }
 0x45c   : > { %v1508_v59 = vpack.c.bf16 %v1247_v24, %v1247_v24 }
 0x45e   : > { %1540 = vst.msk [vmem:[%s2427_s19 + $0x74] sm:$0xf] %vm1286_vm12, %v1508_v59 }
 0x461   : > { %v1249_v27 = vpop.f32.mrf.mxu2  ;;  %v1384_v32 = vpop.permute.xlu0 %1383 }
 0x462   : > { %v1250_v35 = vadd.f32 %v1249_v27, %v2413_v3  ;;  %1463 = vst.msk [vmem:[%s2576_s23 + $0x40] sm:$0xf] %vm1286_vm12, %v1384_v32 }
 0x464   : > { %v1509_v63 = vpack.c.bf16 %v1250_v35, %v1250_v35 }
 0x466   : > { %1541 = vst.msk [vmem:[%s2427_s19 + $0x78] sm:$0xf] %vm1286_vm12, %v1509_v63 }
 0x469   : > { %v1251_v38 = vpop.f32.mrf.mxu2  ;;  %v1414_v33 = vpop.permute.xlu0 %1413 }
 0x46a   : > { %v1252_v0 = vadd.f32 %v1251_v38, %v2413_v3  ;;  %1478 = vst.msk [vmem:[%s2576_s23 + $0x7c] sm:$0xf] %vm1286_vm12, %v1414_v33 }
 0x46c   : > { %v1510_v28 = vpack.c.bf16 %v1252_v0, %v1252_v0 }
 0x46e   : > { %1542 = vst.msk [vmem:[%s2427_s19 + $0x7c] sm:$0xf] %vm1286_vm12, %v1510_v28 }
 0x46f PF: > { %s19_s27 = sadd.s32 1, %s1921_s27  }
 0x470   : > { %p16_p4 = scmp.ge.s32.totalorder %s19_s27, 4  }
 0x472   :  { %18 = sbr.rel (!%p16_p4) target bundleno = 1 (0x1), region = 98 }

</bundles_post_ra>
